<compile_context>
chip_gen: v5e
topology: v5e:2x2
jax: 0.10.0
libtpu: 0.0.40
codegen_flags: <defaults>
</compile_context>

<pallas_src>
import jax
import jax.numpy as jnp
import numpy as np
from jax import lax
from jax.experimental import pallas as pl
from jax.experimental.pallas import tpu as pltpu


# ----------------------------------------------------------------------------- helpers
def _round_up(n, m):
    return ((n + m - 1) // m) * m


def _pad_to(a, shape):
    pads = [(0, s - d) for d, s in zip(a.shape, shape)]
    return jnp.pad(a, pads)


# ----------------------------------------------------------------------------- kernels
def lstm_recurrence_kernel(x_ref, wih_ref, whh_ref, b_ref, h_out_ref, xproj_sc):
    """Runs the whole LSTM recurrence in one invocation.

    x_ref:    (T, Bp, Ep)  embedded sequence (time-major), fully resident in VMEM
    wih_ref:  (Ep, 4Hp)    input weights, transposed, gate order [i, f, g, o]
    whh_ref:  (Hp, 4Hp)    recurrent weights, transposed
    b_ref:    (1, 4Hp)     b_ih + b_hh
    h_out_ref:(Bp, Hp)     final hidden state
    xproj_sc: (T, Bp, 4Hp) scratch: precomputed input projections (+ bias)
    """
    T, Bp, Ep = x_ref.shape
    Hp = h_out_ref.shape[1]

    # One big MXU pass over all timesteps (independent of h), bias folded in.
    x2 = x_ref[...].reshape(T * Bp, Ep)
    xproj = jnp.dot(x2, wih_ref[...], preferred_element_type=jnp.float32) + b_ref[...]
    xproj_sc[...] = xproj.reshape(T, Bp, 4 * Hp)

    def step(t, carry):
        h, c = carry
        # Single small MXU push per recurrence step.
        gates = xproj_sc[t] + jnp.dot(h, whh_ref[...],
                                      preferred_element_type=jnp.float32)
        i_g = jax.nn.sigmoid(gates[:, 0 * Hp:1 * Hp])
        f_g = jax.nn.sigmoid(gates[:, 1 * Hp:2 * Hp])
        g_g = jnp.tanh(gates[:, 2 * Hp:3 * Hp])
        o_g = jax.nn.sigmoid(gates[:, 3 * Hp:4 * Hp])
        c_new = f_g * c + i_g * g_g
        h_new = o_g * jnp.tanh(c_new)
        return h_new, c_new

    h0 = jnp.zeros((Bp, Hp), jnp.float32)
    c0 = jnp.zeros((Bp, Hp), jnp.float32)
    h_final, _ = lax.fori_loop(0, T, step, (h0, c0), unroll=True)
    h_out_ref[...] = h_final


def fc_kernel(h_ref, w_ref, b_ref, o_ref):
    """Vocab projection, tiled over V: (Bp, Hp) @ (Hp, TILE_V) + (1, TILE_V)."""
    o_ref[...] = (jnp.dot(h_ref[...], w_ref[...],
                          preferred_element_type=jnp.float32)
                  + b_ref[...]).astype(o_ref.dtype)


# ----------------------------------------------------------------------------- wrapper
def _prepare_params(params, Ep, Hp, Vp):
    """Zero-pad + pre-transpose weights once (gate-wise padding keeps PyTorch layout)."""
    emb = params["embedding"]                       # (V, E)
    V, E = emb.shape
    H = params["w_hh"].shape[1]

    emb_p = _pad_to(emb, (V, Ep))                                         # (V, Ep)

    w_ih = params["w_ih"].reshape(4, H, E)                                # [i,f,g,o]
    w_ih_p = _pad_to(w_ih, (4, Hp, Ep)).reshape(4 * Hp, Ep)
    w_hh = params["w_hh"].reshape(4, H, H)
    w_hh_p = _pad_to(w_hh, (4, Hp, Hp)).reshape(4 * Hp, Hp)
    b = (params["b_ih"] + params["b_hh"]).reshape(4, H)
    b_p = _pad_to(b, (4, Hp)).reshape(1, 4 * Hp)

    w_fc_p = _pad_to(params["w_fc"], (Vp, Hp))                            # (Vp, Hp)
    b_fc_p = _pad_to(params["b_fc"], (Vp,)).reshape(1, Vp)

    return dict(emb=emb_p, wih_t=w_ih_p.T, whh_t=w_hh_p.T, b=b_p,
                wfc_t=w_fc_p.T, bfc=b_fc_p)


def next_word_predictor(x_tokens, params):
    """x_tokens: (B, T) int32 token ids. Returns logits (B, V) float32."""
    B, T = x_tokens.shape
    V, E = params["embedding"].shape
    H = params["w_hh"].shape[1]

    Bp = _round_up(max(B, 8), 8)          # fill f32 sublanes
    Ep = _round_up(E, 128)                # lane-dense
    Hp = _round_up(H, 128)
    TILE_V = 512 if V >= 512 else 128
    Vp = _round_up(V, TILE_V)

    p = _prepare_params(params, Ep, Hp, Vp)

    # Embedding gather straight into time-major layout: only the tiny (B, T) id array
    # is transposed, the embedded activations are never transposed in HBM.
    x_tbe = jnp.take(p["emb"], x_tokens.T, axis=0)        # (T, B, Ep)
    x_tbe = _pad_to(x_tbe, (T, Bp, Ep)).astype(jnp.float32)

    # --- recurrence: one invocation, whole sequence resident in VMEM ---------------
    h_last = pl.pallas_call(
        lstm_recurrence_kernel,
        out_shape=jax.ShapeDtypeStruct((Bp, Hp), jnp.float32),
        grid=(1,),
        in_specs=[
            pl.BlockSpec((T, Bp, Ep), lambda i: (0, 0, 0)),     # embedded sequence
            pl.BlockSpec((Ep, 4 * Hp), lambda i: (0, 0)),       # W_ih^T
            pl.BlockSpec((Hp, 4 * Hp), lambda i: (0, 0)),       # W_hh^T
            pl.BlockSpec((1, 4 * Hp), lambda i: (0, 0)),        # b_ih + b_hh
        ],
        out_specs=pl.BlockSpec((Bp, Hp), lambda i: (0, 0)),
        scratch_shapes=[pltpu.VMEM((T, Bp, 4 * Hp), jnp.float32)],
        compiler_params=pltpu.CompilerParams(
            dimension_semantics=("arbitrary",)),                # time recurrence is serial
    )(x_tbe, p["wih_t"], p["whh_t"], p["b"])

    # --- vocab projection: separate V-tiled kernel (weights not pinned across T) ---
    logits_p = pl.pallas_call(
        fc_kernel,
        out_shape=jax.ShapeDtypeStruct((Bp, Vp), jnp.float32),
        grid=(Vp // TILE_V,),
        in_specs=[
            pl.BlockSpec((Bp, Hp), lambda j: (0, 0)),           # final hidden state
            pl.BlockSpec((Hp, TILE_V), lambda j: (0, j)),       # W_fc^T tile
            pl.BlockSpec((1, TILE_V), lambda j: (0, j)),        # b_fc tile
        ],
        out_specs=pl.BlockSpec((Bp, TILE_V), lambda j: (0, j)),
        compiler_params=pltpu.CompilerParams(
            dimension_semantics=("parallel",)),
    )(h_last, p["wfc_t"], p["bfc"])

    return logits_p[:B, :V]


# ----------------------------------------------------------------------------- reference
def reference_forward(x_tokens, params):
    """Pure-JAX reference matching the PyTorch module semantics."""
    emb = params["embedding"]
    w_ih, w_hh = params["w_ih"], params["w_hh"]
    b_ih, b_hh = params["b_ih"], params["b_hh"]
    w_fc, b_fc = params["w_fc"], params["b_fc"]
    H = w_hh.shape[1]

    x_emb = jnp.take(emb, x_tokens, axis=0)   # (B, T, E)
    B, T, E = x_emb.shape
    h = jnp.zeros((B, H), jnp.float32)
    c = jnp.zeros((B, H), jnp.float32)
    for t in range(T):
        g = x_emb[:, t, :] @ w_ih.T + h @ w_hh.T + b_ih + b_hh
        i = jax.nn.sigmoid(g[:, 0 * H:1 * H])
        f = jax.nn.sigmoid(g[:, 1 * H:2 * H])
        gg = jnp.tanh(g[:, 2 * H:3 * H])
        o = jax.nn.sigmoid(g[:, 3 * H:4 * H])
        c = f * c + i * gg
        h = o * jnp.tanh(c)
    return h @ w_fc.T + b_fc


if __name__ == "__main__":
    # Small shapes consistent with the module.
    VOCAB, EMB, HID = 64, 32, 32
    B, T = 2, 8

    key = jax.random.PRNGKey(0)
    ks = jax.random.split(key, 8)
    params = {
        "embedding": jax.random.normal(ks[0], (VOCAB, EMB), jnp.float32) * 0.1,
        "w_ih": jax.random.normal(ks[1], (4 * HID, EMB), jnp.float32) * 0.1,
        "w_hh": jax.random.normal(ks[2], (4 * HID, HID), jnp.float32) * 0.1,
        "b_ih": jax.random.normal(ks[3], (4 * HID,), jnp.float32) * 0.1,
        "b_hh": jax.random.normal(ks[4], (4 * HID,), jnp.float32) * 0.1,
        "w_fc": jax.random.normal(ks[5], (VOCAB, HID), jnp.float32) * 0.1,
        "b_fc": jax.random.normal(ks[6], (VOCAB,), jnp.float32) * 0.1,
    }
    x_tokens = jax.random.randint(ks[7], (B, T), 0, VOCAB, dtype=jnp.int32)

    out = next_word_predictor(x_tokens, params)
    out = jax.block_until_ready(out)

    ref = reference_forward(x_tokens, params)
    np.testing.assert_allclose(np.asarray(out), np.asarray(ref),
                               rtol=1e-4, atol=1e-4)
    print("KERNEL_OK")
</pallas_src>

<mosaic_0001>
module attributes {stable_mosaic.version = 11 : i64} {
  func.func @lstm_recurrence_kernel(%arg0: i32, %arg1: memref<8x8x128xf32, #tpu.memory_space<vmem>>, %arg2: memref<128x512xf32, #tpu.memory_space<vmem>>, %arg3: memref<128x512xf32, #tpu.memory_space<vmem>>, %arg4: memref<1x512xf32, #tpu.memory_space<vmem>>, %arg5: memref<8x128xf32, #tpu.memory_space<vmem>>, %arg6: memref<8x8x512xf32, #tpu.memory_space<vmem>>) attributes {dimension_semantics = [#tpu.dimension_semantics<arbitrary>], iteration_bounds = array<i64: 1>, scalar_prefetch = 0 : i64, scratch_operands = 1 : i64, tpu.core_type = #tpu.core_type<tc>, window_params = [{pipeline_mode = #tpu.pipeline_mode<synchronous>, transform_indices = @transform_0, window_bounds = array<i64: 8, 8, 128>}, {pipeline_mode = #tpu.pipeline_mode<synchronous>, transform_indices = @transform_1, window_bounds = array<i64: 128, 512>}, {pipeline_mode = #tpu.pipeline_mode<synchronous>, transform_indices = @transform_2, window_bounds = array<i64: 128, 512>}, {pipeline_mode = #tpu.pipeline_mode<synchronous>, transform_indices = @transform_3, window_bounds = array<i64: 1, 512>}, {pipeline_mode = #tpu.pipeline_mode<synchronous>, transform_indices = @transform_4, window_bounds = array<i64: 8, 128>}]} {
    %c0 = arith.constant 0 : index
    %c0_0 = arith.constant 0 : index
    %c0_1 = arith.constant 0 : index
    %0 = vector.load %arg1[%c0, %c0_0, %c0_1] : memref<8x8x128xf32, #tpu.memory_space<vmem>>, vector<8x8x128xf32>
    %1 = vector.shape_cast %0 : vector<8x8x128xf32> to vector<64x128xf32>
    %c0_2 = arith.constant 0 : index
    %c0_3 = arith.constant 0 : index
    %2 = vector.load %arg2[%c0_2, %c0_3] : memref<128x512xf32, #tpu.memory_space<vmem>>, vector<128x512xf32>
    %cst = arith.constant dense<0.000000e+00> : vector<64x512xf32>
    %3 = tpu.matmul %1, %2, %cst {dimension_numbers = #tpu.dot_dimension_numbers<[1], [0], [0], [1], [0, 0, 1, 1], [], []>} : vector<64x128xf32>, vector<128x512xf32>, vector<64x512xf32> -> vector<64x512xf32>
    %c0_4 = arith.constant 0 : index
    %c0_5 = arith.constant 0 : index
    %4 = vector.load %arg4[%c0_4, %c0_5] : memref<1x512xf32, #tpu.memory_space<vmem>>, vector<1x512xf32>
    %5 = vector.broadcast %4 : vector<1x512xf32> to vector<64x512xf32>
    %6 = arith.addf %3, %5 : vector<64x512xf32>
    %7 = vector.shape_cast %6 : vector<64x512xf32> to vector<8x8x512xf32>
    %c0_6 = arith.constant 0 : index
    %c0_7 = arith.constant 0 : index
    %c0_8 = arith.constant 0 : index
    %8 = vector.load %arg6[%c0_6, %c0_7, %c0_8] : memref<8x8x512xf32, #tpu.memory_space<vmem>>, vector<8x8x512xf32>
    tpu.vector_store %arg6[%c0_6, %c0_7, %c0_8], %7 {strides = array<i32>} : memref<8x8x512xf32, #tpu.memory_space<vmem>>, vector<8x8x512xf32>,
    %cst_9 = arith.constant 0.000000e+00 : f32
    %9 = vector.broadcast %cst_9 : f32 to vector<8x128xf32>
    %cst_10 = arith.constant 0.000000e+00 : f32
    %10 = vector.broadcast %cst_10 : f32 to vector<8x128xf32>
    %c0_i32 = arith.constant 0 : i32
    %11 = arith.index_cast %c0_i32 : i32 to index
    %c0_11 = arith.constant 0 : index
    %c0_12 = arith.constant 0 : index
    %12 = vector.load %arg6[%11, %c0_11, %c0_12] : memref<8x8x512xf32, #tpu.memory_space<vmem>>, vector<1x8x512xf32>
    %13 = vector.shape_cast %12 : vector<1x8x512xf32> to vector<8x512xf32>
    %c0_13 = arith.constant 0 : index
    %c0_14 = arith.constant 0 : index
    %14 = vector.load %arg3[%c0_13, %c0_14] : memref<128x512xf32, #tpu.memory_space<vmem>>, vector<128x512xf32>
    %cst_15 = arith.constant dense<0.000000e+00> : vector<8x512xf32>
    %15 = tpu.matmul %9, %14, %cst_15 {dimension_numbers = #tpu.dot_dimension_numbers<[1], [0], [0], [1], [0, 0, 1, 1], [], []>} : vector<8x128xf32>, vector<128x512xf32>, vector<8x512xf32> -> vector<8x512xf32>
    %16 = arith.addf %13, %15 : vector<8x512xf32>
    %17 = vector.extract_strided_slice %16 {offsets = [0, 0], sizes = [8, 128], strides = [1, 1]} : vector<8x512xf32> to vector<8x128xf32>
    %18 = arith.negf %17 : vector<8x128xf32>
    %19 = math.exp %18 : vector<8x128xf32>
    %cst_16 = arith.constant 1.000000e+00 : f32
    %20 = vector.broadcast %cst_16 : f32 to vector<8x128xf32>
    %21 = arith.addf %20, %19 : vector<8x128xf32>
    %22 = arith.divf %20, %21 : vector<8x128xf32>
    %23 = vector.extract_strided_slice %16 {offsets = [0, 128], sizes = [8, 128], strides = [1, 1]} : vector<8x512xf32> to vector<8x128xf32>
    %24 = arith.negf %23 : vector<8x128xf32>
    %25 = math.exp %24 : vector<8x128xf32>
    %cst_17 = arith.constant 1.000000e+00 : f32
    %26 = vector.broadcast %cst_17 : f32 to vector<8x128xf32>
    %27 = arith.addf %26, %25 : vector<8x128xf32>
    %28 = arith.divf %26, %27 : vector<8x128xf32>
    %29 = vector.extract_strided_slice %16 {offsets = [0, 256], sizes = [8, 128], strides = [1, 1]} : vector<8x512xf32> to vector<8x128xf32>
    %30 = math.tanh %29 : vector<8x128xf32>
    %31 = vector.extract_strided_slice %16 {offsets = [0, 384], sizes = [8, 128], strides = [1, 1]} : vector<8x512xf32> to vector<8x128xf32>
    %32 = arith.negf %31 : vector<8x128xf32>
    %33 = math.exp %32 : vector<8x128xf32>
    %cst_18 = arith.constant 1.000000e+00 : f32
    %34 = vector.broadcast %cst_18 : f32 to vector<8x128xf32>
    %35 = arith.addf %34, %33 : vector<8x128xf32>
    %36 = arith.divf %34, %35 : vector<8x128xf32>
    %37 = arith.mulf %28, %10 : vector<8x128xf32>
    %38 = arith.mulf %22, %30 : vector<8x128xf32>
    %39 = arith.addf %37, %38 : vector<8x128xf32>
    %40 = math.tanh %39 : vector<8x128xf32>
    %41 = arith.mulf %36, %40 : vector<8x128xf32>
    %c1_i32 = arith.constant 1 : i32
    %42 = arith.index_cast %c1_i32 : i32 to index
    %c0_19 = arith.constant 0 : index
    %c0_20 = arith.constant 0 : index
    %43 = vector.load %arg6[%42, %c0_19, %c0_20] : memref<8x8x512xf32, #tpu.memory_space<vmem>>, vector<1x8x512xf32>
    %44 = vector.shape_cast %43 : vector<1x8x512xf32> to vector<8x512xf32>
    %c0_21 = arith.constant 0 : index
    %c0_22 = arith.constant 0 : index
    %45 = vector.load %arg3[%c0_21, %c0_22] : memref<128x512xf32, #tpu.memory_space<vmem>>, vector<128x512xf32>
    %cst_23 = arith.constant dense<0.000000e+00> : vector<8x512xf32>
    %46 = tpu.matmul %41, %45, %cst_23 {dimension_numbers = #tpu.dot_dimension_numbers<[1], [0], [0], [1], [0, 0, 1, 1], [], []>} : vector<8x128xf32>, vector<128x512xf32>, vector<8x512xf32> -> vector<8x512xf32>
    %47 = arith.addf %44, %46 : vector<8x512xf32>
    %48 = vector.extract_strided_slice %47 {offsets = [0, 0], sizes = [8, 128], strides = [1, 1]} : vector<8x512xf32> to vector<8x128xf32>
    %49 = arith.negf %48 : vector<8x128xf32>
    %50 = math.exp %49 : vector<8x128xf32>
    %cst_24 = arith.constant 1.000000e+00 : f32
    %51 = vector.broadcast %cst_24 : f32 to vector<8x128xf32>
    %52 = arith.addf %51, %50 : vector<8x128xf32>
    %53 = arith.divf %51, %52 : vector<8x128xf32>
    %54 = vector.extract_strided_slice %47 {offsets = [0, 128], sizes = [8, 128], strides = [1, 1]} : vector<8x512xf32> to vector<8x128xf32>
    %55 = arith.negf %54 : vector<8x128xf32>
    %56 = math.exp %55 : vector<8x128xf32>
    %cst_25 = arith.constant 1.000000e+00 : f32
    %57 = vector.broadcast %cst_25 : f32 to vector<8x128xf32>
    %58 = arith.addf %57, %56 : vector<8x128xf32>
    %59 = arith.divf %57, %58 : vector<8x128xf32>
    %60 = vector.extract_strided_slice %47 {offsets = [0, 256], sizes = [8, 128], strides = [1, 1]} : vector<8x512xf32> to vector<8x128xf32>
    %61 = math.tanh %60 : vector<8x128xf32>
    %62 = vector.extract_strided_slice %47 {offsets = [0, 384], sizes = [8, 128], strides = [1, 1]} : vector<8x512xf32> to vector<8x128xf32>
    %63 = arith.negf %62 : vector<8x128xf32>
    %64 = math.exp %63 : vector<8x128xf32>
    %cst_26 = arith.constant 1.000000e+00 : f32
    %65 = vector.broadcast %cst_26 : f32 to vector<8x128xf32>
    %66 = arith.addf %65, %64 : vector<8x128xf32>
    %67 = arith.divf %65, %66 : vector<8x128xf32>
    %68 = arith.mulf %59, %39 : vector<8x128xf32>
    %69 = arith.mulf %53, %61 : vector<8x128xf32>
    %70 = arith.addf %68, %69 : vector<8x128xf32>
    %71 = math.tanh %70 : vector<8x128xf32>
    %72 = arith.mulf %67, %71 : vector<8x128xf32>
    %c2_i32 = arith.constant 2 : i32
    %73 = arith.index_cast %c2_i32 : i32 to index
    %c0_27 = arith.constant 0 : index
    %c0_28 = arith.constant 0 : index
    %74 = vector.load %arg6[%73, %c0_27, %c0_28] : memref<8x8x512xf32, #tpu.memory_space<vmem>>, vector<1x8x512xf32>
    %75 = vector.shape_cast %74 : vector<1x8x512xf32> to vector<8x512xf32>
    %c0_29 = arith.constant 0 : index
    %c0_30 = arith.constant 0 : index
    %76 = vector.load %arg3[%c0_29, %c0_30] : memref<128x512xf32, #tpu.memory_space<vmem>>, vector<128x512xf32>
    %cst_31 = arith.constant dense<0.000000e+00> : vector<8x512xf32>
    %77 = tpu.matmul %72, %76, %cst_31 {dimension_numbers = #tpu.dot_dimension_numbers<[1], [0], [0], [1], [0, 0, 1, 1], [], []>} : vector<8x128xf32>, vector<128x512xf32>, vector<8x512xf32> -> vector<8x512xf32>
    %78 = arith.addf %75, %77 : vector<8x512xf32>
    %79 = vector.extract_strided_slice %78 {offsets = [0, 0], sizes = [8, 128], strides = [1, 1]} : vector<8x512xf32> to vector<8x128xf32>
    %80 = arith.negf %79 : vector<8x128xf32>
    %81 = math.exp %80 : vector<8x128xf32>
    %cst_32 = arith.constant 1.000000e+00 : f32
    %82 = vector.broadcast %cst_32 : f32 to vector<8x128xf32>
    %83 = arith.addf %82, %81 : vector<8x128xf32>
    %84 = arith.divf %82, %83 : vector<8x128xf32>
    %85 = vector.extract_strided_slice %78 {offsets = [0, 128], sizes = [8, 128], strides = [1, 1]} : vector<8x512xf32> to vector<8x128xf32>
    %86 = arith.negf %85 : vector<8x128xf32>
    %87 = math.exp %86 : vector<8x128xf32>
    %cst_33 = arith.constant 1.000000e+00 : f32
    %88 = vector.broadcast %cst_33 : f32 to vector<8x128xf32>
    %89 = arith.addf %88, %87 : vector<8x128xf32>
    %90 = arith.divf %88, %89 : vector<8x128xf32>
    %91 = vector.extract_strided_slice %78 {offsets = [0, 256], sizes = [8, 128], strides = [1, 1]} : vector<8x512xf32> to vector<8x128xf32>
    %92 = math.tanh %91 : vector<8x128xf32>
    %93 = vector.extract_strided_slice %78 {offsets = [0, 384], sizes = [8, 128], strides = [1, 1]} : vector<8x512xf32> to vector<8x128xf32>
    %94 = arith.negf %93 : vector<8x128xf32>
    %95 = math.exp %94 : vector<8x128xf32>
    %cst_34 = arith.constant 1.000000e+00 : f32
    %96 = vector.broadcast %cst_34 : f32 to vector<8x128xf32>
    %97 = arith.addf %96, %95 : vector<8x128xf32>
    %98 = arith.divf %96, %97 : vector<8x128xf32>
    %99 = arith.mulf %90, %70 : vector<8x128xf32>
    %100 = arith.mulf %84, %92 : vector<8x128xf32>
    %101 = arith.addf %99, %100 : vector<8x128xf32>
    %102 = math.tanh %101 : vector<8x128xf32>
    %103 = arith.mulf %98, %102 : vector<8x128xf32>
    %c3_i32 = arith.constant 3 : i32
    %104 = arith.index_cast %c3_i32 : i32 to index
    %c0_35 = arith.constant 0 : index
    %c0_36 = arith.constant 0 : index
    %105 = vector.load %arg6[%104, %c0_35, %c0_36] : memref<8x8x512xf32, #tpu.memory_space<vmem>>, vector<1x8x512xf32>
    %106 = vector.shape_cast %105 : vector<1x8x512xf32> to vector<8x512xf32>
    %c0_37 = arith.constant 0 : index
    %c0_38 = arith.constant 0 : index
    %107 = vector.load %arg3[%c0_37, %c0_38] : memref<128x512xf32, #tpu.memory_space<vmem>>, vector<128x512xf32>
    %cst_39 = arith.constant dense<0.000000e+00> : vector<8x512xf32>
    %108 = tpu.matmul %103, %107, %cst_39 {dimension_numbers = #tpu.dot_dimension_numbers<[1], [0], [0], [1], [0, 0, 1, 1], [], []>} : vector<8x128xf32>, vector<128x512xf32>, vector<8x512xf32> -> vector<8x512xf32>
    %109 = arith.addf %106, %108 : vector<8x512xf32>
    %110 = vector.extract_strided_slice %109 {offsets = [0, 0], sizes = [8, 128], strides = [1, 1]} : vector<8x512xf32> to vector<8x128xf32>
    %111 = arith.negf %110 : vector<8x128xf32>
    %112 = math.exp %111 : vector<8x128xf32>
    %cst_40 = arith.constant 1.000000e+00 : f32
    %113 = vector.broadcast %cst_40 : f32 to vector<8x128xf32>
    %114 = arith.addf %113, %112 : vector<8x128xf32>
    %115 = arith.divf %113, %114 : vector<8x128xf32>
    %116 = vector.extract_strided_slice %109 {offsets = [0, 128], sizes = [8, 128], strides = [1, 1]} : vector<8x512xf32> to vector<8x128xf32>
    %117 = arith.negf %116 : vector<8x128xf32>
    %118 = math.exp %117 : vector<8x128xf32>
    %cst_41 = arith.constant 1.000000e+00 : f32
    %119 = vector.broadcast %cst_41 : f32 to vector<8x128xf32>
    %120 = arith.addf %119, %118 : vector<8x128xf32>
    %121 = arith.divf %119, %120 : vector<8x128xf32>
    %122 = vector.extract_strided_slice %109 {offsets = [0, 256], sizes = [8, 128], strides = [1, 1]} : vector<8x512xf32> to vector<8x128xf32>
    %123 = math.tanh %122 : vector<8x128xf32>
    %124 = vector.extract_strided_slice %109 {offsets = [0, 384], sizes = [8, 128], strides = [1, 1]} : vector<8x512xf32> to vector<8x128xf32>
    %125 = arith.negf %124 : vector<8x128xf32>
    %126 = math.exp %125 : vector<8x128xf32>
    %cst_42 = arith.constant 1.000000e+00 : f32
    %127 = vector.broadcast %cst_42 : f32 to vector<8x128xf32>
    %128 = arith.addf %127, %126 : vector<8x128xf32>
    %129 = arith.divf %127, %128 : vector<8x128xf32>
    %130 = arith.mulf %121, %101 : vector<8x128xf32>
    %131 = arith.mulf %115, %123 : vector<8x128xf32>
    %132 = arith.addf %130, %131 : vector<8x128xf32>
    %133 = math.tanh %132 : vector<8x128xf32>
    %134 = arith.mulf %129, %133 : vector<8x128xf32>
    %c4_i32 = arith.constant 4 : i32
    %135 = arith.index_cast %c4_i32 : i32 to index
    %c0_43 = arith.constant 0 : index
    %c0_44 = arith.constant 0 : index
    %136 = vector.load %arg6[%135, %c0_43, %c0_44] : memref<8x8x512xf32, #tpu.memory_space<vmem>>, vector<1x8x512xf32>
    %137 = vector.shape_cast %136 : vector<1x8x512xf32> to vector<8x512xf32>
    %c0_45 = arith.constant 0 : index
    %c0_46 = arith.constant 0 : index
    %138 = vector.load %arg3[%c0_45, %c0_46] : memref<128x512xf32, #tpu.memory_space<vmem>>, vector<128x512xf32>
    %cst_47 = arith.constant dense<0.000000e+00> : vector<8x512xf32>
    %139 = tpu.matmul %134, %138, %cst_47 {dimension_numbers = #tpu.dot_dimension_numbers<[1], [0], [0], [1], [0, 0, 1, 1], [], []>} : vector<8x128xf32>, vector<128x512xf32>, vector<8x512xf32> -> vector<8x512xf32>
    %140 = arith.addf %137, %139 : vector<8x512xf32>
    %141 = vector.extract_strided_slice %140 {offsets = [0, 0], sizes = [8, 128], strides = [1, 1]} : vector<8x512xf32> to vector<8x128xf32>
    %142 = arith.negf %141 : vector<8x128xf32>
    %143 = math.exp %142 : vector<8x128xf32>
    %cst_48 = arith.constant 1.000000e+00 : f32
    %144 = vector.broadcast %cst_48 : f32 to vector<8x128xf32>
    %145 = arith.addf %144, %143 : vector<8x128xf32>
    %146 = arith.divf %144, %145 : vector<8x128xf32>
    %147 = vector.extract_strided_slice %140 {offsets = [0, 128], sizes = [8, 128], strides = [1, 1]} : vector<8x512xf32> to vector<8x128xf32>
    %148 = arith.negf %147 : vector<8x128xf32>
    %149 = math.exp %148 : vector<8x128xf32>
    %cst_49 = arith.constant 1.000000e+00 : f32
    %150 = vector.broadcast %cst_49 : f32 to vector<8x128xf32>
    %151 = arith.addf %150, %149 : vector<8x128xf32>
    %152 = arith.divf %150, %151 : vector<8x128xf32>
    %153 = vector.extract_strided_slice %140 {offsets = [0, 256], sizes = [8, 128], strides = [1, 1]} : vector<8x512xf32> to vector<8x128xf32>
    %154 = math.tanh %153 : vector<8x128xf32>
    %155 = vector.extract_strided_slice %140 {offsets = [0, 384], sizes = [8, 128], strides = [1, 1]} : vector<8x512xf32> to vector<8x128xf32>
    %156 = arith.negf %155 : vector<8x128xf32>
    %157 = math.exp %156 : vector<8x128xf32>
    %cst_50 = arith.constant 1.000000e+00 : f32
    %158 = vector.broadcast %cst_50 : f32 to vector<8x128xf32>
    %159 = arith.addf %158, %157 : vector<8x128xf32>
    %160 = arith.divf %158, %159 : vector<8x128xf32>
    %161 = arith.mulf %152, %132 : vector<8x128xf32>
    %162 = arith.mulf %146, %154 : vector<8x128xf32>
    %163 = arith.addf %161, %162 : vector<8x128xf32>
    %164 = math.tanh %163 : vector<8x128xf32>
    %165 = arith.mulf %160, %164 : vector<8x128xf32>
    %c5_i32 = arith.constant 5 : i32
    %166 = arith.index_cast %c5_i32 : i32 to index
    %c0_51 = arith.constant 0 : index
    %c0_52 = arith.constant 0 : index
    %167 = vector.load %arg6[%166, %c0_51, %c0_52] : memref<8x8x512xf32, #tpu.memory_space<vmem>>, vector<1x8x512xf32>
    %168 = vector.shape_cast %167 : vector<1x8x512xf32> to vector<8x512xf32>
    %c0_53 = arith.constant 0 : index
    %c0_54 = arith.constant 0 : index
    %169 = vector.load %arg3[%c0_53, %c0_54] : memref<128x512xf32, #tpu.memory_space<vmem>>, vector<128x512xf32>
    %cst_55 = arith.constant dense<0.000000e+00> : vector<8x512xf32>
    %170 = tpu.matmul %165, %169, %cst_55 {dimension_numbers = #tpu.dot_dimension_numbers<[1], [0], [0], [1], [0, 0, 1, 1], [], []>} : vector<8x128xf32>, vector<128x512xf32>, vector<8x512xf32> -> vector<8x512xf32>
    %171 = arith.addf %168, %170 : vector<8x512xf32>
    %172 = vector.extract_strided_slice %171 {offsets = [0, 0], sizes = [8, 128], strides = [1, 1]} : vector<8x512xf32> to vector<8x128xf32>
    %173 = arith.negf %172 : vector<8x128xf32>
    %174 = math.exp %173 : vector<8x128xf32>
    %cst_56 = arith.constant 1.000000e+00 : f32
    %175 = vector.broadcast %cst_56 : f32 to vector<8x128xf32>
    %176 = arith.addf %175, %174 : vector<8x128xf32>
    %177 = arith.divf %175, %176 : vector<8x128xf32>
    %178 = vector.extract_strided_slice %171 {offsets = [0, 128], sizes = [8, 128], strides = [1, 1]} : vector<8x512xf32> to vector<8x128xf32>
    %179 = arith.negf %178 : vector<8x128xf32>
    %180 = math.exp %179 : vector<8x128xf32>
    %cst_57 = arith.constant 1.000000e+00 : f32
    %181 = vector.broadcast %cst_57 : f32 to vector<8x128xf32>
    %182 = arith.addf %181, %180 : vector<8x128xf32>
    %183 = arith.divf %181, %182 : vector<8x128xf32>
    %184 = vector.extract_strided_slice %171 {offsets = [0, 256], sizes = [8, 128], strides = [1, 1]} : vector<8x512xf32> to vector<8x128xf32>
    %185 = math.tanh %184 : vector<8x128xf32>
    %186 = vector.extract_strided_slice %171 {offsets = [0, 384], sizes = [8, 128], strides = [1, 1]} : vector<8x512xf32> to vector<8x128xf32>
    %187 = arith.negf %186 : vector<8x128xf32>
    %188 = math.exp %187 : vector<8x128xf32>
    %cst_58 = arith.constant 1.000000e+00 : f32
    %189 = vector.broadcast %cst_58 : f32 to vector<8x128xf32>
    %190 = arith.addf %189, %188 : vector<8x128xf32>
    %191 = arith.divf %189, %190 : vector<8x128xf32>
    %192 = arith.mulf %183, %163 : vector<8x128xf32>
    %193 = arith.mulf %177, %185 : vector<8x128xf32>
    %194 = arith.addf %192, %193 : vector<8x128xf32>
    %195 = math.tanh %194 : vector<8x128xf32>
    %196 = arith.mulf %191, %195 : vector<8x128xf32>
    %c6_i32 = arith.constant 6 : i32
    %197 = arith.index_cast %c6_i32 : i32 to index
    %c0_59 = arith.constant 0 : index
    %c0_60 = arith.constant 0 : index
    %198 = vector.load %arg6[%197, %c0_59, %c0_60] : memref<8x8x512xf32, #tpu.memory_space<vmem>>, vector<1x8x512xf32>
    %199 = vector.shape_cast %198 : vector<1x8x512xf32> to vector<8x512xf32>
    %c0_61 = arith.constant 0 : index
    %c0_62 = arith.constant 0 : index
    %200 = vector.load %arg3[%c0_61, %c0_62] : memref<128x512xf32, #tpu.memory_space<vmem>>, vector<128x512xf32>
    %cst_63 = arith.constant dense<0.000000e+00> : vector<8x512xf32>
    %201 = tpu.matmul %196, %200, %cst_63 {dimension_numbers = #tpu.dot_dimension_numbers<[1], [0], [0], [1], [0, 0, 1, 1], [], []>} : vector<8x128xf32>, vector<128x512xf32>, vector<8x512xf32> -> vector<8x512xf32>
    %202 = arith.addf %199, %201 : vector<8x512xf32>
    %203 = vector.extract_strided_slice %202 {offsets = [0, 0], sizes = [8, 128], strides = [1, 1]} : vector<8x512xf32> to vector<8x128xf32>
    %204 = arith.negf %203 : vector<8x128xf32>
    %205 = math.exp %204 : vector<8x128xf32>
    %cst_64 = arith.constant 1.000000e+00 : f32
    %206 = vector.broadcast %cst_64 : f32 to vector<8x128xf32>
    %207 = arith.addf %206, %205 : vector<8x128xf32>
    %208 = arith.divf %206, %207 : vector<8x128xf32>
    %209 = vector.extract_strided_slice %202 {offsets = [0, 128], sizes = [8, 128], strides = [1, 1]} : vector<8x512xf32> to vector<8x128xf32>
    %210 = arith.negf %209 : vector<8x128xf32>
    %211 = math.exp %210 : vector<8x128xf32>
    %cst_65 = arith.constant 1.000000e+00 : f32
    %212 = vector.broadcast %cst_65 : f32 to vector<8x128xf32>
    %213 = arith.addf %212, %211 : vector<8x128xf32>
    %214 = arith.divf %212, %213 : vector<8x128xf32>
    %215 = vector.extract_strided_slice %202 {offsets = [0, 256], sizes = [8, 128], strides = [1, 1]} : vector<8x512xf32> to vector<8x128xf32>
    %216 = math.tanh %215 : vector<8x128xf32>
    %217 = vector.extract_strided_slice %202 {offsets = [0, 384], sizes = [8, 128], strides = [1, 1]} : vector<8x512xf32> to vector<8x128xf32>
    %218 = arith.negf %217 : vector<8x128xf32>
    %219 = math.exp %218 : vector<8x128xf32>
    %cst_66 = arith.constant 1.000000e+00 : f32
    %220 = vector.broadcast %cst_66 : f32 to vector<8x128xf32>
    %221 = arith.addf %220, %219 : vector<8x128xf32>
    %222 = arith.divf %220, %221 : vector<8x128xf32>
    %223 = arith.mulf %214, %194 : vector<8x128xf32>
    %224 = arith.mulf %208, %216 : vector<8x128xf32>
    %225 = arith.addf %223, %224 : vector<8x128xf32>
    %226 = math.tanh %225 : vector<8x128xf32>
    %227 = arith.mulf %222, %226 : vector<8x128xf32>
    %c7_i32 = arith.constant 7 : i32
    %228 = arith.index_cast %c7_i32 : i32 to index
    %c0_67 = arith.constant 0 : index
    %c0_68 = arith.constant 0 : index
    %229 = vector.load %arg6[%228, %c0_67, %c0_68] : memref<8x8x512xf32, #tpu.memory_space<vmem>>, vector<1x8x512xf32>
    %230 = vector.shape_cast %229 : vector<1x8x512xf32> to vector<8x512xf32>
    %c0_69 = arith.constant 0 : index
    %c0_70 = arith.constant 0 : index
    %231 = vector.load %arg3[%c0_69, %c0_70] : memref<128x512xf32, #tpu.memory_space<vmem>>, vector<128x512xf32>
    %cst_71 = arith.constant dense<0.000000e+00> : vector<8x512xf32>
    %232 = tpu.matmul %227, %231, %cst_71 {dimension_numbers = #tpu.dot_dimension_numbers<[1], [0], [0], [1], [0, 0, 1, 1], [], []>} : vector<8x128xf32>, vector<128x512xf32>, vector<8x512xf32> -> vector<8x512xf32>
    %233 = arith.addf %230, %232 : vector<8x512xf32>
    %234 = vector.extract_strided_slice %233 {offsets = [0, 0], sizes = [8, 128], strides = [1, 1]} : vector<8x512xf32> to vector<8x128xf32>
    %235 = arith.negf %234 : vector<8x128xf32>
    %236 = math.exp %235 : vector<8x128xf32>
    %cst_72 = arith.constant 1.000000e+00 : f32
    %237 = vector.broadcast %cst_72 : f32 to vector<8x128xf32>
    %238 = arith.addf %237, %236 : vector<8x128xf32>
    %239 = arith.divf %237, %238 : vector<8x128xf32>
    %240 = vector.extract_strided_slice %233 {offsets = [0, 128], sizes = [8, 128], strides = [1, 1]} : vector<8x512xf32> to vector<8x128xf32>
    %241 = arith.negf %240 : vector<8x128xf32>
    %242 = math.exp %241 : vector<8x128xf32>
    %cst_73 = arith.constant 1.000000e+00 : f32
    %243 = vector.broadcast %cst_73 : f32 to vector<8x128xf32>
    %244 = arith.addf %243, %242 : vector<8x128xf32>
    %245 = arith.divf %243, %244 : vector<8x128xf32>
    %246 = vector.extract_strided_slice %233 {offsets = [0, 256], sizes = [8, 128], strides = [1, 1]} : vector<8x512xf32> to vector<8x128xf32>
    %247 = math.tanh %246 : vector<8x128xf32>
    %248 = vector.extract_strided_slice %233 {offsets = [0, 384], sizes = [8, 128], strides = [1, 1]} : vector<8x512xf32> to vector<8x128xf32>
    %249 = arith.negf %248 : vector<8x128xf32>
    %250 = math.exp %249 : vector<8x128xf32>
    %cst_74 = arith.constant 1.000000e+00 : f32
    %251 = vector.broadcast %cst_74 : f32 to vector<8x128xf32>
    %252 = arith.addf %251, %250 : vector<8x128xf32>
    %253 = arith.divf %251, %252 : vector<8x128xf32>
    %254 = arith.mulf %245, %225 : vector<8x128xf32>
    %255 = arith.mulf %239, %247 : vector<8x128xf32>
    %256 = arith.addf %254, %255 : vector<8x128xf32>
    %257 = math.tanh %256 : vector<8x128xf32>
    %258 = arith.mulf %253, %257 : vector<8x128xf32>
    %c8_i32 = arith.constant 8 : i32
    %c0_75 = arith.constant 0 : index
    %c0_76 = arith.constant 0 : index
    %259 = vector.load %arg5[%c0_75, %c0_76] : memref<8x128xf32, #tpu.memory_space<vmem>>, vector<8x128xf32>
    tpu.vector_store %arg5[%c0_75, %c0_76], %258 {strides = array<i32>} : memref<8x128xf32, #tpu.memory_space<vmem>>, vector<8x128xf32>,
    return
  }
  func.func @transform_0(%arg0: i32) -> (i32, i32, i32) {
    %c0_i32 = arith.constant 0 : i32
    %c0_i32_0 = arith.constant 0 : i32
    %c0_i32_1 = arith.constant 0 : i32
    %c0_i32_2 = arith.constant 0 : i32
    return %c0_i32, %c0_i32_0, %c0_i32_1 : i32, i32, i32
  }
  func.func @transform_1(%arg0: i32) -> (i32, i32) {
    %c0_i32 = arith.constant 0 : i32
    %c0_i32_0 = arith.constant 0 : i32
    %c0_i32_1 = arith.constant 0 : i32
    return %c0_i32, %c0_i32_0 : i32, i32
  }
  func.func @transform_2(%arg0: i32) -> (i32, i32) {
    %c0_i32 = arith.constant 0 : i32
    %c0_i32_0 = arith.constant 0 : i32
    %c0_i32_1 = arith.constant 0 : i32
    return %c0_i32, %c0_i32_0 : i32, i32
  }
  func.func @transform_3(%arg0: i32) -> (i32, i32) {
    %c0_i32 = arith.constant 0 : i32
    %c0_i32_0 = arith.constant 0 : i32
    %c0_i32_1 = arith.constant 0 : i32
    return %c0_i32, %c0_i32_0 : i32, i32
  }
  func.func @transform_4(%arg0: i32) -> (i32, i32) {
    %c0_i32 = arith.constant 0 : i32
    %c0_i32_0 = arith.constant 0 : i32
    %c0_i32_1 = arith.constant 0 : i32
    return %c0_i32, %c0_i32_0 : i32, i32
  }
}

</mosaic_0001>

<bundles_post_ra>
// kernel: tpu_custom_call.1
= control target key start
LH: loop header
LB: loop body
LE: loop exit
PB: predicated region body
PF: predicated region fallthrough
CT: control target
= control target key end

     0   :  { %9 = vsyncpa [#allocation4], 0  ;;  %s2956_s0 = inlined_call_operand.hbm [shape: f32[8,8,128], index: 0, kind: input, shape index: {}]   ;;  %s2957_s1 = inlined_call_operand.hbm [shape: f32[128,512], index: 1, kind: input, shape index: {}]   ;;  %s2958_s2 = inlined_call_operand.hbm [shape: f32[128,512], index: 2, kind: input, shape index: {}]   ;;  %s2959_s3 = inlined_call_operand.hbm [shape: f32[1,512], index: 3, kind: input, shape index: {}]   ;;  %s2960_s4 = inlined_call_operand.hbm [shape: f32[8,128], index: 4, kind: output, shape index: {}]  }
   0x1   :  { %10 = vsyncpa [#allocation7], 0 }
   0x2   :  { %11 = vsyncpa [#allocation10], 0  ;;  %s30_s17 = sshll.u32 %s2957_s1, 4  ;;  %s31_s17 = int_to_ptr.hbm [resolvable:$true] %s30_s17 }
   0x3   :  { %12 = vsyncpa [#allocation5], 0  ;;  %s2010_s18 = smov [#allocation6]   ;;  %s17_s22 = sshll.u32 %s2956_s0, 4  ;;  %s18_s22 = int_to_ptr.hbm [resolvable:$true] %s17_s22 }
   0x4   :  { %s32_s19 = sshll.u32 %s2010_s18, 4  ;;  %s2011_s23 = smov 512   ;;  %s33_s19 = int_to_ptr.vmem [resolvable:$true] %s32_s19 }
   0x5   :  { %s2012_s24 = smov 32   ;;  %s2013_s25 = smov [#allocation3]  }
   0x6   :  { %38 = dma.hbm_to_vmem [thread:$0]  %s31_s17, 8192, %s33_s19, [#allocation7], %s2011_s23, %s2011_s23, %s2012_s24  }
   0x7   :  { %s19_s26 = sshll.u32 %s2013_s25, 4  ;;  %s2014_s27 = smov 128   ;;  %s20_s26 = int_to_ptr.vmem [resolvable:$true] %s19_s26 }
   0x8   :  { %s2015_s28 = smov 8   ;;  %s43_s30 = sshll.u32 %s2958_s2, 4  ;;  %s44_s30 = int_to_ptr.hbm [resolvable:$true] %s43_s30 }
   0x9   :  { %25 = dma.hbm_to_vmem [thread:$0]  %s18_s22, 1024, %s20_s26, [#allocation4], %s2014_s27, %s2014_s27, %s2015_s28  }
   0xa   :  { %s2016_s5 = smov [#allocation8]   ;;  %s57_s8 = sshll.u32 %s2959_s3, 4  ;;  %s58_s8 = int_to_ptr.hbm [resolvable:$true] %s57_s8 }
   0xb   :  { %s45_s6 = sshll.u32 %s2016_s5, 4  ;;  %s2017_s9 = smov [#allocation9]   ;;  %s46_s6 = int_to_ptr.vmem [resolvable:$true] %s45_s6 }
   0xc   :  { %51 = dma.hbm_to_vmem [thread:$0]  %s44_s30, 8192, %s46_s6, [#allocation7], %s2011_s23, %s2011_s23, %s2012_s24  }
   0xd   :  { %s59_s10 = sshll.u32 %s2017_s9, 4  ;;  %s60_s10 = int_to_ptr.vmem [resolvable:$true] %s59_s10 }
   0xe   :  { %62 = dma.hbm_to_vmem [thread:$0]  %s58_s8, 64, %s60_s10, [#allocation10]  }
   0xf   :  { %2002 = dma.done.wait [#allocation4], 1024  }
  0x10   :  { %2003 = vsyncadd [#allocation4], 4294966272 }
  0x11   :  { %2004 = dma.done.wait [#allocation7], 16384  }
  0x12   :  { %2005 = vsyncadd [#allocation7], 4294950912 }
  0x13   :  { %2006 = dma.done.wait [#allocation10], 64  }
  0x14   :  { %2007 = vsyncadd [#allocation10], 4294967232  ;;  %v147_v0 = vld [vmem:[#allocation6 + $0x1e0] sm:$0xff]  ;;  %v148_v1 = vld [vmem:[#allocation6 + $0x1e8] sm:$0xff]  ;;  %s2019_s2 = smov [#allocation11]   ;;  %s1644_s13 = sshll.u32 %s2960_s4, 4  ;;  %s1645_s13 = int_to_ptr.hbm [resolvable:$true] %s1644_s13 }
  0x15   :  { %v149_v2 = vld [vmem:[#allocation6 + $0x1f0] sm:$0xff]  ;;  %161 = vmatpush.msra.mxu0 %v147_v0  ;;  %202 = vmatpush.msra.mxu1 %v148_v1  ;;  %v150_v3 = vld [vmem:[#allocation6 + $0x1f8] sm:$0xff]  ;;  %v143_v4 = vld [vmem:[#allocation6 + $0x1c0] sm:$0xff]  ;;  %s1642_s3 = sshll.u32 %s2019_s2, 4  ;;  %s1643_s3 = int_to_ptr.vmem [resolvable:$true] %s1642_s3 }
  0x16   :  { %v144_v5 = vld [vmem:[#allocation6 + $0x1c8] sm:$0xff]  ;;  %243 = vmatpush.msra.mxu2 %v149_v2  ;;  %284 = vmatpush.msra.mxu3 %v150_v3  ;;  %v145_v6 = vld [vmem:[#allocation6 + $0x1d0] sm:$0xff]  ;;  %v146_v7 = vld [vmem:[#allocation6 + $0x1d8] sm:$0xff] }
  0x17   :  { %v139_v8 = vld [vmem:[#allocation6 + $0x1a0] sm:$0xff]  ;;  %162 = vmatpush.msra.mxu0 %v143_v4  ;;  %203 = vmatpush.msra.mxu1 %v144_v5  ;;  %v140_v9 = vld [vmem:[#allocation6 + $0x1a8] sm:$0xff]  ;;  %v141_v10 = vld [vmem:[#allocation6 + $0x1b0] sm:$0xff] }
  0x18   :  { %v142_v11 = vld [vmem:[#allocation6 + $0x1b8] sm:$0xff]  ;;  %244 = vmatpush.msra.mxu2 %v145_v6  ;;  %285 = vmatpush.msra.mxu3 %v146_v7  ;;  %v135_v12 = vld [vmem:[#allocation6 + $0x180] sm:$0xff]  ;;  %v136_v13 = vld [vmem:[#allocation6 + $0x188] sm:$0xff] }
  0x19   :  { %163 = vmatpush.msra.mxu0 %v139_v8  ;;  %204 = vmatpush.msra.mxu1 %v140_v9  ;;  %v137_v14 = vld [vmem:[#allocation6 + $0x190] sm:$0xff]  ;;  %v138_v15 = vld [vmem:[#allocation6 + $0x198] sm:$0xff]  ;;  %v131_v16 = vld [vmem:[#allocation6 + $0x160] sm:$0xff] }
  0x1a   :  { %245 = vmatpush.msra.mxu2 %v141_v10  ;;  %286 = vmatpush.msra.mxu3 %v142_v11  ;;  %v132_v17 = vld [vmem:[#allocation6 + $0x168] sm:$0xff]  ;;  %v133_v18 = vld [vmem:[#allocation6 + $0x170] sm:$0xff]  ;;  %v134_v19 = vld [vmem:[#allocation6 + $0x178] sm:$0xff] }
  0x1b   :  { %164 = vmatpush.msra.mxu0 %v135_v12  ;;  %205 = vmatpush.msra.mxu1 %v136_v13  ;;  %v127_v20 = vld [vmem:[#allocation6 + $0x140] sm:$0xff]  ;;  %v128_v21 = vld [vmem:[#allocation6 + $0x148] sm:$0xff]  ;;  %v129_v22 = vld [vmem:[#allocation6 + $0x150] sm:$0xff] }
  0x1c   :  { %246 = vmatpush.msra.mxu2 %v137_v14  ;;  %287 = vmatpush.msra.mxu3 %v138_v15  ;;  %v130_v23 = vld [vmem:[#allocation6 + $0x158] sm:$0xff]  ;;  %v123_v24 = vld [vmem:[#allocation6 + $0x120] sm:$0xff]  ;;  %v124_v25 = vld [vmem:[#allocation6 + $0x128] sm:$0xff] }
  0x1d   :  { %165 = vmatpush.msra.mxu0 %v131_v16  ;;  %206 = vmatpush.msra.mxu1 %v132_v17  ;;  %v125_v26 = vld [vmem:[#allocation6 + $0x130] sm:$0xff]  ;;  %v126_v27 = vld [vmem:[#allocation6 + $0x138] sm:$0xff]  ;;  %v119_v28 = vld [vmem:[#allocation6 + $0x100] sm:$0xff] }
  0x1e   :  { %247 = vmatpush.msra.mxu2 %v133_v18  ;;  %288 = vmatpush.msra.mxu3 %v134_v19  ;;  %v120_v29 = vld [vmem:[#allocation6 + $0x108] sm:$0xff]  ;;  %v121_v30 = vld [vmem:[#allocation6 + $0x110] sm:$0xff]  ;;  %v122_v31 = vld [vmem:[#allocation6 + $0x118] sm:$0xff] }
  0x1f   :  { %166 = vmatpush.msra.mxu0 %v127_v20  ;;  %207 = vmatpush.msra.mxu1 %v128_v21  ;;  %v115_v32 = vld [vmem:[#allocation6 + $0xe0] sm:$0xff]  ;;  %v116_v33 = vld [vmem:[#allocation6 + $0xe8] sm:$0xff]  ;;  %v117_v34 = vld [vmem:[#allocation6 + $0xf0] sm:$0xff] }
  0x20   :  { %248 = vmatpush.msra.mxu2 %v129_v22  ;;  %289 = vmatpush.msra.mxu3 %v130_v23  ;;  %v118_v35 = vld [vmem:[#allocation6 + $0xf8] sm:$0xff]  ;;  %v111_v36 = vld [vmem:[#allocation6 + $0xc0] sm:$0xff]  ;;  %v112_v37 = vld [vmem:[#allocation6 + $0xc8] sm:$0xff] }
  0x21   :  { %167 = vmatpush.msra.mxu0 %v123_v24  ;;  %208 = vmatpush.msra.mxu1 %v124_v25  ;;  %v113_v38 = vld [vmem:[#allocation6 + $0xd0] sm:$0xff]  ;;  %v114_v39 = vld [vmem:[#allocation6 + $0xd8] sm:$0xff]  ;;  %v107_v40 = vld [vmem:[#allocation6 + $0xa0] sm:$0xff] }
  0x22   :  { %249 = vmatpush.msra.mxu2 %v125_v26  ;;  %290 = vmatpush.msra.mxu3 %v126_v27  ;;  %v108_v41 = vld [vmem:[#allocation6 + $0xa8] sm:$0xff]  ;;  %v109_v42 = vld [vmem:[#allocation6 + $0xb0] sm:$0xff]  ;;  %v110_v43 = vld [vmem:[#allocation6 + $0xb8] sm:$0xff] }
  0x23   :  { %168 = vmatpush.msra.mxu0 %v119_v28  ;;  %209 = vmatpush.msra.mxu1 %v120_v29  ;;  %v103_v44 = vld [vmem:[#allocation6 + $0x80] sm:$0xff]  ;;  %v104_v45 = vld [vmem:[#allocation6 + $0x88] sm:$0xff]  ;;  %v105_v46 = vld [vmem:[#allocation6 + $0x90] sm:$0xff] }
  0x24   :  { %250 = vmatpush.msra.mxu2 %v121_v30  ;;  %291 = vmatpush.msra.mxu3 %v122_v31  ;;  %v106_v47 = vld [vmem:[#allocation6 + $0x98] sm:$0xff]  ;;  %v99_v48 = vld [vmem:[#allocation6 + $0x60] sm:$0xff]  ;;  %v100_v49 = vld [vmem:[#allocation6 + $0x68] sm:$0xff] }
  0x25   :  { %169 = vmatpush.msra.mxu0 %v115_v32  ;;  %210 = vmatpush.msra.mxu1 %v116_v33  ;;  %v101_v50 = vld [vmem:[#allocation6 + $0x70] sm:$0xff]  ;;  %v102_v51 = vld [vmem:[#allocation6 + $0x78] sm:$0xff]  ;;  %v95_v52 = vld [vmem:[#allocation6 + $0x40] sm:$0xff] }
  0x26   :  { %251 = vmatpush.msra.mxu2 %v117_v34  ;;  %292 = vmatpush.msra.mxu3 %v118_v35  ;;  %v96_v53 = vld [vmem:[#allocation6 + $0x48] sm:$0xff]  ;;  %v97_v54 = vld [vmem:[#allocation6 + $0x50] sm:$0xff]  ;;  %v98_v55 = vld [vmem:[#allocation6 + $0x58] sm:$0xff] }
  0x27   :  { %170 = vmatpush.msra.mxu0 %v111_v36  ;;  %211 = vmatpush.msra.mxu1 %v112_v37  ;;  %v91_v56 = vld [vmem:[#allocation6 + $0x20] sm:$0xff]  ;;  %v92_v57 = vld [vmem:[#allocation6 + $0x28] sm:$0xff]  ;;  %v93_v58 = vld [vmem:[#allocation6 + $0x30] sm:$0xff] }
  0x28   :  { %252 = vmatpush.msra.mxu2 %v113_v38  ;;  %293 = vmatpush.msra.mxu3 %v114_v39  ;;  %v94_v59 = vld [vmem:[#allocation6 + $0x38] sm:$0xff]  ;;  %v87_v60 = vld [vmem:[#allocation6] sm:$0xff]  ;;  %v88_v61 = vld [vmem:[#allocation6 + $0x8] sm:$0xff] }
  0x29   :  { %171 = vmatpush.msra.mxu0 %v107_v40  ;;  %212 = vmatpush.msra.mxu1 %v108_v41  ;;  %v89_v62 = vld [vmem:[#allocation6 + $0x10] sm:$0xff]  ;;  %v90_v63 = vld [vmem:[#allocation6 + $0x18] sm:$0xff]  ;;  %v79_v0 = vld [vmem:[#allocation3] sm:$0xff] }
  0x2a   :  { %253 = vmatpush.msra.mxu2 %v109_v42  ;;  %294 = vmatpush.msra.mxu3 %v110_v43  ;;  %v2057_v1 = vld [vmem:[#allocation8 + $0x1e0] sm:$0xff]  ;;  %v2059_v2 = vld [vmem:[#allocation8 + $0x1e8] sm:$0xff]  ;;  %v2061_v3 = vld [vmem:[#allocation8 + $0x1f8] sm:$0xff] }
  0x2b   :  { %172 = vmatpush.msra.mxu0 %v103_v44  ;;  %213 = vmatpush.msra.mxu1 %v104_v45  ;;  %v2063_v4 = vld [vmem:[#allocation8 + $0x1f0] sm:$0xff]  ;;  %v2065_v5 = vld [vmem:[#allocation8 + $0x1c0] sm:$0xff]  ;;  %v2067_v6 = vld [vmem:[#allocation8 + $0x1c8] sm:$0xff] }
  0x2c   :  { %254 = vmatpush.msra.mxu2 %v105_v46  ;;  %295 = vmatpush.msra.mxu3 %v106_v47  ;;  %v2071_v7 = vld [vmem:[#allocation8 + $0x1d8] sm:$0xff]  ;;  %v2073_v8 = vld [vmem:[#allocation8 + $0x1d0] sm:$0xff]  ;;  %v2076_v9 = vld [vmem:[#allocation8 + $0x1a0] sm:$0xff] }
  0x2d   :  { %173 = vmatpush.msra.mxu0 %v99_v48  ;;  %214 = vmatpush.msra.mxu1 %v100_v49  ;;  %v2078_v10 = vld [vmem:[#allocation8 + $0x1a8] sm:$0xff]  ;;  %v2083_v11 = vld [vmem:[#allocation8 + $0x1b8] sm:$0xff]  ;;  %v2085_v12 = vld [vmem:[#allocation8 + $0x1b0] sm:$0xff] }
  0x2e   :  { %255 = vmatpush.msra.mxu2 %v101_v50  ;;  %296 = vmatpush.msra.mxu3 %v102_v51  ;;  %v80_v13 = vld [vmem:[#allocation3 + $0x8] sm:$0xff]  ;;  %v2091_v14 = vld [vmem:[#allocation8 + $0x180] sm:$0xff]  ;;  %v2097_v16 = vld [vmem:[#allocation8 + $0x198] sm:$0xff] }
  0x2f   :  { %174 = vmatpush.msra.mxu0 %v95_v52  ;;  %215 = vmatpush.msra.mxu1 %v96_v53  ;;  %v2093_v15 = vld [vmem:[#allocation8 + $0x188] sm:$0xff]  ;;  %v2099_v17 = vld [vmem:[#allocation8 + $0x190] sm:$0xff]  ;;  %v2101_v18 = vld [vmem:[#allocation8 + $0x160] sm:$0xff] }
  0x30   :  { %256 = vmatpush.msra.mxu2 %v97_v54  ;;  %297 = vmatpush.msra.mxu3 %v98_v55  ;;  %v2103_v19 = vld [vmem:[#allocation8 + $0x168] sm:$0xff]  ;;  %v2107_v20 = vld [vmem:[#allocation8 + $0x178] sm:$0xff]  ;;  %v2109_v21 = vld [vmem:[#allocation8 + $0x170] sm:$0xff] }
  0x31   :  { %175 = vmatpush.msra.mxu0 %v91_v56  ;;  %216 = vmatpush.msra.mxu1 %v92_v57  ;;  %v2112_v22 = vld [vmem:[#allocation8 + $0x140] sm:$0xff]  ;;  %v2114_v23 = vld [vmem:[#allocation8 + $0x148] sm:$0xff]  ;;  %v2119_v24 = vld [vmem:[#allocation8 + $0x158] sm:$0xff] }
  0x32   :  { %257 = vmatpush.msra.mxu2 %v93_v58  ;;  %298 = vmatpush.msra.mxu3 %v94_v59  ;;  %v2121_v25 = vld [vmem:[#allocation8 + $0x150] sm:$0xff]  ;;  %v2127_v27 = vld [vmem:[#allocation8 + $0x120] sm:$0xff]  ;;  %v2129_v28 = vld [vmem:[#allocation8 + $0x128] sm:$0xff] }
  0x33   :  { %176 = vmatpush.msra.mxu0 %v87_v60  ;;  %217 = vmatpush.msra.mxu1 %v88_v61  ;;  %v81_v26 = vld [vmem:[#allocation3 + $0x10] sm:$0xff]  ;;  %v2133_v29 = vld [vmem:[#allocation8 + $0x138] sm:$0xff]  ;;  %v2137_v31 = vld [vmem:[#allocation8 + $0x100] sm:$0xff] }
  0x34   :  { %258 = vmatpush.msra.mxu2 %v89_v62  ;;  %299 = vmatpush.msra.mxu3 %v90_v63  ;;  %v2135_v30 = vld [vmem:[#allocation8 + $0x130] sm:$0xff]  ;;  %v2139_v32 = vld [vmem:[#allocation8 + $0x108] sm:$0xff]  ;;  %v2143_v33 = vld [vmem:[#allocation8 + $0x118] sm:$0xff] }
  0x35   :  { %177 = vmatmul.f32.vlgmr.msra.gmra.mxu0 %v79_v0  ;;  %218 = vmatmul.f32.vlgmr.msra.gmra.mxu1 %v79_v0  ;;  %v2145_v34 = vld [vmem:[#allocation8 + $0x110] sm:$0xff]  ;;  %v2148_v35 = vld [vmem:[#allocation8 + $0xe0] sm:$0xff]  ;;  %v2150_v36 = vld [vmem:[#allocation8 + $0xe8] sm:$0xff] }
  0x36   :  { %259 = vmatmul.f32.vlgmr.msra.gmra.mxu2 %v79_v0  ;;  %300 = vmatmul.f32.vlgmr.msra.gmra.mxu3 %v79_v0  ;;  %v2155_v37 = vld [vmem:[#allocation8 + $0xf8] sm:$0xff]  ;;  %v2157_v38 = vld [vmem:[#allocation8 + $0xf0] sm:$0xff]  ;;  %v2163_v40 = vld [vmem:[#allocation8 + $0xc0] sm:$0xff] }
  0x37   :  { %425 = vmatpush.msrb.mxu0 %v2057_v1  ;;  %445 = vmatpush.msrb.mxu1 %v2059_v2  ;;  %v82_v39 = vld [vmem:[#allocation3 + $0x18] sm:$0xff]  ;;  %v2165_v41 = vld [vmem:[#allocation8 + $0xc8] sm:$0xff]  ;;  %v2171_v43 = vld [vmem:[#allocation8 + $0xd0] sm:$0xff] }
  0x38   :  { %485 = vmatpush.msrb.mxu3 %v2061_v3  ;;  %465 = vmatpush.msrb.mxu2 %v2063_v4  ;;  %v2169_v42 = vld [vmem:[#allocation8 + $0xd8] sm:$0xff]  ;;  %3049 = vst [vmem:[#allocation17_spill] sm:$0xff] %v2171_v43  ;;  %v2173_v44 = vld [vmem:[#allocation8 + $0xa0] sm:$0xff]  ;;  %v2175_v45 = vld [vmem:[#allocation8 + $0xa8] sm:$0xff] }
  0x39   :  { %426 = vmatpush.msrb.mxu0 %v2065_v5  ;;  %446 = vmatpush.msrb.mxu1 %v2067_v6  ;;  %3048 = vst [vmem:[#allocation16_spill] sm:$0xff] %v2169_v42  ;;  %v2179_v46 = vld [vmem:[#allocation8 + $0xb8] sm:$0xff]  ;;  %v2181_v47 = vld [vmem:[#allocation8 + $0xb0] sm:$0xff]  ;;  %v2184_v48 = vld [vmem:[#allocation8 + $0x80] sm:$0xff] }
  0x3a   :  { %486 = vmatpush.msrb.mxu3 %v2071_v7  ;;  %466 = vmatpush.msrb.mxu2 %v2073_v8  ;;  %3050 = vst [vmem:[#allocation18_spill] sm:$0xff] %v2173_v44  ;;  %v2186_v49 = vld [vmem:[#allocation8 + $0x88] sm:$0xff]  ;;  %v2191_v50 = vld [vmem:[#allocation8 + $0x98] sm:$0xff]  ;;  %v2193_v51 = vld [vmem:[#allocation8 + $0x90] sm:$0xff] }
  0x3b   :  { %427 = vmatpush.msrb.mxu0 %v2076_v9  ;;  %447 = vmatpush.msrb.mxu1 %v2078_v10  ;;  %3051 = vst [vmem:[#allocation19_spill] sm:$0xff] %v2175_v45  ;;  %v83_v52 = vld [vmem:[#allocation3 + $0x20] sm:$0xff]  ;;  %v2201_v54 = vld [vmem:[#allocation8 + $0x68] sm:$0xff]  ;;  %v2205_v55 = vld [vmem:[#allocation8 + $0x78] sm:$0xff] }
  0x3c   :  { %487 = vmatpush.msrb.mxu3 %v2083_v11  ;;  %467 = vmatpush.msrb.mxu2 %v2085_v12  ;;  %3052 = vst [vmem:[#allocation20_spill] sm:$0xff] %v2179_v46  ;;  %v2199_v53 = vld [vmem:[#allocation8 + $0x60] sm:$0xff]  ;;  %v2207_v56 = vld [vmem:[#allocation8 + $0x70] sm:$0xff]  ;;  %v2211_v58 = vld [vmem:[#allocation8 + $0x48] sm:$0xff] }
  0x3d   :  { %180 = vmatmul.f32.gmra.mxu0 %v80_v13  ;;  %221 = vmatmul.f32.gmra.mxu1 %v80_v13  ;;  %3053 = vst [vmem:[#allocation21_spill] sm:$0xff] %v2181_v47  ;;  %v2209_v57 = vld [vmem:[#allocation8 + $0x40] sm:$0xff]  ;;  %v2215_v59 = vld [vmem:[#allocation8 + $0x58] sm:$0xff]  ;;  %v2217_v60 = vld [vmem:[#allocation8 + $0x50] sm:$0xff] }
  0x3e   :  { %262 = vmatmul.f32.gmra.mxu2 %v80_v13  ;;  %303 = vmatmul.f32.gmra.mxu3 %v80_v13  ;;  %3054 = vst [vmem:[#allocation22_spill] sm:$0xff] %v2184_v48  ;;  %v2220_v61 = vld [vmem:[#allocation8 + $0x20] sm:$0xff]  ;;  %v2222_v62 = vld [vmem:[#allocation8 + $0x28] sm:$0xff]  ;;  %v2227_v63 = vld [vmem:[#allocation8 + $0x30] sm:$0xff] }
  0x3f   :  { %428 = vmatpush.msrb.mxu0 %v2091_v14  ;;  %448 = vmatpush.msrb.mxu1 %v2093_v15  ;;  %3055 = vst [vmem:[#allocation23_spill] sm:$0xff] %v2186_v49  ;;  %v2229_v0 = vld [vmem:[#allocation8 + $0x38] sm:$0xff]  ;;  %v84_v13 = vld [vmem:[#allocation3 + $0x28] sm:$0xff] }
  0x40   :  { %488 = vmatpush.msrb.mxu3 %v2097_v16  ;;  %468 = vmatpush.msrb.mxu2 %v2099_v17  ;;  %3056 = vst [vmem:[#allocation24_spill] sm:$0xff] %v2191_v50 }
  0x41   :  { %429 = vmatpush.msrb.mxu0 %v2101_v18  ;;  %449 = vmatpush.msrb.mxu1 %v2103_v19  ;;  %3057 = vst [vmem:[#allocation25_spill] sm:$0xff] %v2193_v51 }
  0x42   :  { %489 = vmatpush.msrb.mxu3 %v2107_v20  ;;  %469 = vmatpush.msrb.mxu2 %v2109_v21  ;;  %3058 = vst [vmem:[#allocation26_spill] sm:$0xff] %v2199_v53 }
  0x43   :  { %430 = vmatpush.msrb.mxu0 %v2112_v22  ;;  %450 = vmatpush.msrb.mxu1 %v2114_v23  ;;  %3059 = vst [vmem:[#allocation27_spill] sm:$0xff] %v2201_v54 }
  0x44   :  { %490 = vmatpush.msrb.mxu3 %v2119_v24  ;;  %470 = vmatpush.msrb.mxu2 %v2121_v25  ;;  %3060 = vst [vmem:[#allocation28_spill] sm:$0xff] %v2205_v55 }
  0x45   :  { %183 = vmatmul.f32.gmra.mxu0 %v81_v26  ;;  %224 = vmatmul.f32.gmra.mxu1 %v81_v26  ;;  %3061 = vst [vmem:[#allocation29_spill] sm:$0xff] %v2207_v56 }
  0x46   :  { %265 = vmatmul.f32.gmra.mxu2 %v81_v26  ;;  %306 = vmatmul.f32.gmra.mxu3 %v81_v26  ;;  %3062 = vst [vmem:[#allocation30_spill] sm:$0xff] %v2209_v57  ;;  %v2235_v26 = vld [vmem:[#allocation8] sm:$0xff] }
  0x47   :  { %431 = vmatpush.msrb.mxu0 %v2127_v27  ;;  %451 = vmatpush.msrb.mxu1 %v2129_v28  ;;  %3063 = vst [vmem:[#allocation31_spill] sm:$0xff] %v2211_v58 }
  0x48   :  { %491 = vmatpush.msrb.mxu3 %v2133_v29  ;;  %471 = vmatpush.msrb.mxu2 %v2135_v30  ;;  %3064 = vst [vmem:[#allocation32_spill] sm:$0xff] %v2215_v59 }
  0x49   :  { %432 = vmatpush.msrb.mxu0 %v2137_v31  ;;  %452 = vmatpush.msrb.mxu1 %v2139_v32  ;;  %3065 = vst [vmem:[#allocation33_spill] sm:$0xff] %v2217_v60 }
  0x4a   :  { %492 = vmatpush.msrb.mxu3 %v2143_v33  ;;  %472 = vmatpush.msrb.mxu2 %v2145_v34  ;;  %3066 = vst [vmem:[#allocation34_spill] sm:$0xff] %v2220_v61 }
  0x4b   :  { %433 = vmatpush.msrb.mxu0 %v2148_v35  ;;  %453 = vmatpush.msrb.mxu1 %v2150_v36  ;;  %3067 = vst [vmem:[#allocation35_spill] sm:$0xff] %v2222_v62 }
  0x4c   :  { %493 = vmatpush.msrb.mxu3 %v2155_v37  ;;  %473 = vmatpush.msrb.mxu2 %v2157_v38  ;;  %3068 = vst [vmem:[#allocation36_spill] sm:$0xff] %v2227_v63 }
  0x4d   :  { %186 = vmatmul.f32.gmra.mxu0 %v82_v39  ;;  %227 = vmatmul.f32.gmra.mxu1 %v82_v39  ;;  %3069 = vst [vmem:[#allocation37_spill] sm:$0xff] %v2229_v0 }
  0x4e   :  { %268 = vmatmul.f32.gmra.mxu2 %v82_v39  ;;  %309 = vmatmul.f32.gmra.mxu3 %v82_v39  ;;  %3070 = vst [vmem:[#allocation38_spill] sm:$0xff] %v2235_v26  ;;  %v2237_v39 = vld [vmem:[#allocation8 + $0x8] sm:$0xff] }
  0x4f   :  { %434 = vmatpush.msrb.mxu0 %v2163_v40  ;;  %454 = vmatpush.msrb.mxu1 %v2165_v41  ;;  %3071 = vst [vmem:[#allocation39_spill] sm:$0xff] %v2237_v39 }
  0x50   :  { %494 = vmatpush.msrb.mxu3 %v2169_v42  ;;  %474 = vmatpush.msrb.mxu2 %v2171_v43 }
  0x51   :  { %435 = vmatpush.msrb.mxu0 %v2173_v44  ;;  %455 = vmatpush.msrb.mxu1 %v2175_v45 }
  0x52   :  { %495 = vmatpush.msrb.mxu3 %v2179_v46  ;;  %475 = vmatpush.msrb.mxu2 %v2181_v47 }
  0x53   :  { %436 = vmatpush.msrb.mxu0 %v2184_v48  ;;  %456 = vmatpush.msrb.mxu1 %v2186_v49 }
  0x54   :  { %496 = vmatpush.msrb.mxu3 %v2191_v50  ;;  %476 = vmatpush.msrb.mxu2 %v2193_v51 }
  0x55   :  { %189 = vmatmul.f32.gmra.mxu0 %v83_v52  ;;  %230 = vmatmul.f32.gmra.mxu1 %v83_v52 }
  0x56   :  { %271 = vmatmul.f32.gmra.mxu2 %v83_v52  ;;  %312 = vmatmul.f32.gmra.mxu3 %v83_v52  ;;  %v2241_v52 = vld [vmem:[#allocation8 + $0x10] sm:$0xff] }
  0x57   :  { %437 = vmatpush.msrb.mxu0 %v2199_v53  ;;  %457 = vmatpush.msrb.mxu1 %v2201_v54  ;;  %3072 = vst [vmem:[#allocation40_spill] sm:$0xff] %v2241_v52 }
  0x58   :  { %497 = vmatpush.msrb.mxu3 %v2205_v55  ;;  %477 = vmatpush.msrb.mxu2 %v2207_v56 }
  0x59   :  { %438 = vmatpush.msrb.mxu0 %v2209_v57  ;;  %458 = vmatpush.msrb.mxu1 %v2211_v58  ;;  %v2243_v58 = vld [vmem:[#allocation8 + $0x18] sm:$0xff] }
  0x5a   :  { %498 = vmatpush.msrb.mxu3 %v2215_v59  ;;  %478 = vmatpush.msrb.mxu2 %v2217_v60  ;;  %3073 = vst [vmem:[#allocation41_spill] sm:$0xff] %v2243_v58 }
  0x5b   :  { %439 = vmatpush.msrb.mxu0 %v2220_v61  ;;  %459 = vmatpush.msrb.mxu1 %v2222_v62 }
  0x5c   :  { %479 = vmatpush.msrb.mxu2 %v2227_v63  ;;  %499 = vmatpush.msrb.mxu3 %v2229_v0  ;;  %v85_v0 = vld [vmem:[#allocation3 + $0x30] sm:$0xff] }
  0x5d   :  { %192 = vmatmul.f32.gmra.mxu0 %v84_v13  ;;  %233 = vmatmul.f32.gmra.mxu1 %v84_v13 }
  0x5e   :  { %274 = vmatmul.f32.gmra.mxu2 %v84_v13  ;;  %315 = vmatmul.f32.gmra.mxu3 %v84_v13  ;;  %v86_v13 = vld [vmem:[#allocation3 + $0x38] sm:$0xff] }
  0x5f   :  { %440 = vmatpush.msrb.mxu0 %v2235_v26  ;;  %460 = vmatpush.msrb.mxu1 %v2237_v39 }
  0x60   :  { %480 = vmatpush.msrb.mxu2 %v2241_v52  ;;  %500 = vmatpush.msrb.mxu3 %v2243_v58 }
  0x61   :  { %577 = vmatpush.msra.mxu0 %v2057_v1  ;;  %597 = vmatpush.msra.mxu1 %v2059_v2 }
  0x62   :  { %617 = vmatpush.msra.mxu2 %v2063_v4  ;;  %637 = vmatpush.msra.mxu3 %v2061_v3 }
  0x63   :  { %578 = vmatpush.msra.mxu0 %v2065_v5  ;;  %598 = vmatpush.msra.mxu1 %v2067_v6 }
  0x64   :  { %618 = vmatpush.msra.mxu2 %v2073_v8  ;;  %638 = vmatpush.msra.mxu3 %v2071_v7 }
  0x65   :  { %195 = vmatmul.f32.gmra.mxu0 %v85_v0  ;;  %236 = vmatmul.f32.gmra.mxu1 %v85_v0 }
  0x66   :  { %277 = vmatmul.f32.gmra.mxu2 %v85_v0  ;;  %318 = vmatmul.f32.gmra.mxu3 %v85_v0  ;;  %v2018_v0 = vmov 0.0  }
  0x67   :  { %579 = vmatpush.msra.mxu0 %v2076_v9  ;;  %599 = vmatpush.msra.mxu1 %v2078_v10 }
  0x68   :  { %619 = vmatpush.msra.mxu2 %v2085_v12  ;;  %639 = vmatpush.msra.mxu3 %v2083_v11 }
  0x69   :  { %580 = vmatpush.msra.mxu0 %v2091_v14  ;;  %600 = vmatpush.msra.mxu1 %v2093_v15 }
  0x6a   :  { %620 = vmatpush.msra.mxu2 %v2099_v17  ;;  %640 = vmatpush.msra.mxu3 %v2097_v16 }
  0x6b   :  { %581 = vmatpush.msra.mxu0 %v2101_v18  ;;  %601 = vmatpush.msra.mxu1 %v2103_v19 }
  0x6c   :  { %621 = vmatpush.msra.mxu2 %v2109_v21  ;;  %641 = vmatpush.msra.mxu3 %v2107_v20 }
  0x6d   :  { %198 = vmatmul.f32.gmra.mxu0 %v86_v13  ;;  %239 = vmatmul.f32.gmra.mxu1 %v86_v13 }
  0x6e   :  { %280 = vmatmul.f32.gmra.mxu2 %v86_v13  ;;  %321 = vmatmul.f32.gmra.mxu3 %v86_v13  ;;  %v3074_v13 = vld [vmem:[#allocation31_spill] sm:$0xff] }
  0x6f   :  { %582 = vmatpush.msra.mxu0 %v2112_v22  ;;  %602 = vmatpush.msra.mxu1 %v2114_v23 }
  0x70   :  { %622 = vmatpush.msra.mxu2 %v2121_v25  ;;  %642 = vmatpush.msra.mxu3 %v2119_v24 }
  0x71   :  { %583 = vmatpush.msra.mxu0 %v2127_v27  ;;  %603 = vmatpush.msra.mxu1 %v2129_v28 }
  0x72   :  { %623 = vmatpush.msra.mxu2 %v2135_v30  ;;  %643 = vmatpush.msra.mxu3 %v2133_v29 }
  0x73   :  { %584 = vmatpush.msra.mxu0 %v2137_v31  ;;  %604 = vmatpush.msra.mxu1 %v2139_v32 }
  0x74   :  { %624 = vmatpush.msra.mxu2 %v2145_v34  ;;  %644 = vmatpush.msra.mxu3 %v2143_v33 }
  0x75   :  { %441 = vmatmul.f32.vlgmr.msrb.gmra.mxu0 %v2018_v0  ;;  %461 = vmatmul.f32.vlgmr.msrb.gmra.mxu1 %v2018_v0 }
  0x76   :  { %481 = vmatmul.f32.vlgmr.msrb.gmra.mxu2 %v2018_v0  ;;  %501 = vmatmul.f32.vlgmr.msrb.gmra.mxu3 %v2018_v0  ;;  %v3075_v0 = vld [vmem:[#allocation37_spill] sm:$0xff] }
  0x77   :  { %585 = vmatpush.msra.mxu0 %v2148_v35  ;;  %605 = vmatpush.msra.mxu1 %v2150_v36 }
  0x78   :  { %625 = vmatpush.msra.mxu2 %v2157_v38  ;;  %645 = vmatpush.msra.mxu3 %v2155_v37 }
  0x79   :  { %586 = vmatpush.msra.mxu0 %v2163_v40  ;;  %606 = vmatpush.msra.mxu1 %v2165_v41 }
  0x7a   :  { %626 = vmatpush.msra.mxu2 %v2171_v43  ;;  %646 = vmatpush.msra.mxu3 %v2169_v42 }
  0x7b   :  { %587 = vmatpush.msra.mxu0 %v2173_v44  ;;  %607 = vmatpush.msra.mxu1 %v2175_v45 }
  0x7c   :  { %627 = vmatpush.msra.mxu2 %v2181_v47  ;;  %647 = vmatpush.msra.mxu3 %v2179_v46 }
  0x7d   :  { %588 = vmatpush.msra.mxu0 %v2184_v48  ;;  %608 = vmatpush.msra.mxu1 %v2186_v49 }
  0x7e   :  { %628 = vmatpush.msra.mxu2 %v2193_v51  ;;  %648 = vmatpush.msra.mxu3 %v2191_v50 }
  0x7f   :  { %589 = vmatpush.msra.mxu0 %v2199_v53  ;;  %609 = vmatpush.msra.mxu1 %v2201_v54 }
  0x80   :  { %629 = vmatpush.msra.mxu2 %v2207_v56  ;;  %649 = vmatpush.msra.mxu3 %v2205_v55 }
  0x81   :  { %590 = vmatpush.msra.mxu0 %v2209_v57  ;;  %610 = vmatpush.msra.mxu1 %v3074_v13 }
  0x82   :  { %630 = vmatpush.msra.mxu2 %v2217_v60  ;;  %650 = vmatpush.msra.mxu3 %v2215_v59 }
  0x83   :  { %591 = vmatpush.msra.mxu0 %v2220_v61  ;;  %611 = vmatpush.msra.mxu1 %v2222_v62 }
  0x84   :  { %631 = vmatpush.msra.mxu2 %v2227_v63  ;;  %651 = vmatpush.msra.mxu3 %v3075_v0 }
  0x85   :  { %592 = vmatpush.msra.mxu0 %v2235_v26  ;;  %612 = vmatpush.msra.mxu1 %v2237_v39 }
  0x86   :  { %632 = vmatpush.msra.mxu2 %v2241_v52  ;;  %652 = vmatpush.msra.mxu3 %v2243_v58 }
  0x87   :  { %729 = vmatpush.msrb.mxu0 %v2057_v1  ;;  %749 = vmatpush.msrb.mxu1 %v2059_v2 }
  0x88   :  { %769 = vmatpush.msrb.mxu2 %v2063_v4  ;;  %789 = vmatpush.msrb.mxu3 %v2061_v3 }
  0x89   :  { %730 = vmatpush.msrb.mxu0 %v2065_v5  ;;  %750 = vmatpush.msrb.mxu1 %v2067_v6 }
  0x8a   :  { %770 = vmatpush.msrb.mxu2 %v2073_v8  ;;  %790 = vmatpush.msrb.mxu3 %v2071_v7 }
  0x8b   :  { %731 = vmatpush.msrb.mxu0 %v2076_v9  ;;  %751 = vmatpush.msrb.mxu1 %v2078_v10 }
  0x8c   :  { %771 = vmatpush.msrb.mxu2 %v2085_v12  ;;  %791 = vmatpush.msrb.mxu3 %v2083_v11 }
  0x8d   :  { %732 = vmatpush.msrb.mxu0 %v2091_v14  ;;  %752 = vmatpush.msrb.mxu1 %v2093_v15 }
  0x8e   :  { %772 = vmatpush.msrb.mxu2 %v2099_v17  ;;  %792 = vmatpush.msrb.mxu3 %v2097_v16 }
  0x8f   :  { %733 = vmatpush.msrb.mxu0 %v2101_v18  ;;  %753 = vmatpush.msrb.mxu1 %v2103_v19 }
  0x90   :  { %773 = vmatpush.msrb.mxu2 %v2109_v21  ;;  %793 = vmatpush.msrb.mxu3 %v2107_v20 }
  0x91   :  { %734 = vmatpush.msrb.mxu0 %v2112_v22  ;;  %754 = vmatpush.msrb.mxu1 %v2114_v23 }
  0x92   :  { %774 = vmatpush.msrb.mxu2 %v2121_v25  ;;  %794 = vmatpush.msrb.mxu3 %v2119_v24 }
  0x93   :  { %735 = vmatpush.msrb.mxu0 %v2127_v27  ;;  %755 = vmatpush.msrb.mxu1 %v2129_v28 }
  0x94   :  { %775 = vmatpush.msrb.mxu2 %v2135_v30  ;;  %795 = vmatpush.msrb.mxu3 %v2133_v29 }
  0x95   :  { %736 = vmatpush.msrb.mxu0 %v2137_v31  ;;  %756 = vmatpush.msrb.mxu1 %v2139_v32 }
  0x96   :  { %776 = vmatpush.msrb.mxu2 %v2145_v34  ;;  %796 = vmatpush.msrb.mxu3 %v2143_v33 }
  0x97   :  { %737 = vmatpush.msrb.mxu0 %v2148_v35  ;;  %757 = vmatpush.msrb.mxu1 %v2150_v36 }
  0x98   :  { %777 = vmatpush.msrb.mxu2 %v2157_v38  ;;  %797 = vmatpush.msrb.mxu3 %v2155_v37 }
  0x99   :  { %738 = vmatpush.msrb.mxu0 %v2163_v40  ;;  %758 = vmatpush.msrb.mxu1 %v2165_v41 }
  0x9a   :  { %778 = vmatpush.msrb.mxu2 %v2171_v43  ;;  %798 = vmatpush.msrb.mxu3 %v2169_v42 }
  0x9b   :  { %739 = vmatpush.msrb.mxu0 %v2173_v44  ;;  %759 = vmatpush.msrb.mxu1 %v2175_v45 }
  0x9c   :  { %779 = vmatpush.msrb.mxu2 %v2181_v47  ;;  %799 = vmatpush.msrb.mxu3 %v2179_v46 }
  0x9d   :  { %740 = vmatpush.msrb.mxu0 %v2184_v48  ;;  %760 = vmatpush.msrb.mxu1 %v2186_v49 }
  0x9e   :  { %780 = vmatpush.msrb.mxu2 %v2193_v51  ;;  %800 = vmatpush.msrb.mxu3 %v2191_v50 }
  0x9f   :  { %741 = vmatpush.msrb.mxu0 %v2199_v53  ;;  %761 = vmatpush.msrb.mxu1 %v2201_v54 }
  0xa0   :  { %781 = vmatpush.msrb.mxu2 %v2207_v56  ;;  %801 = vmatpush.msrb.mxu3 %v2205_v55 }
  0xa1   :  { %742 = vmatpush.msrb.mxu0 %v2209_v57  ;;  %762 = vmatpush.msrb.mxu1 %v3074_v13  ;;  %v151_v57 = vld [vmem:[#allocation9] sm:$0xf] }
  0xa2   :  { %782 = vmatpush.msrb.mxu2 %v2217_v60  ;;  %802 = vmatpush.msrb.mxu3 %v2215_v59  ;;  %v153_v59 = vperm.slane %v151_v57, 0  ;;  %v154_v55 = vperm.slane %v151_v57, 1 }
  0xa3   :  { %743 = vmatpush.msrb.mxu0 %v2220_v61  ;;  %763 = vmatpush.msrb.mxu1 %v2222_v62 }
  0xa4   :  { %783 = vmatpush.msrb.mxu2 %v2227_v63  ;;  %803 = vmatpush.msrb.mxu3 %v3075_v0 }
  0xa5   :  { %744 = vmatpush.msrb.mxu0 %v2235_v26  ;;  %764 = vmatpush.msrb.mxu1 %v2237_v39  ;;  %v2385_v39 = vperm.slane %v151_v57, 2 }
  0xa6   :  { %784 = vmatpush.msrb.mxu2 %v2241_v52  ;;  %804 = vmatpush.msrb.mxu3 %v2243_v58  ;;  %v156_v52 = vperm.slane %v151_v57, 3 }
  0xb2   :  { %v178_v13 = vpop.f32.mrf.mxu0  ;;  %v219_v60 = vpop.f32.mrf.mxu1 }
  0xb9   :  { %v2377_v61 = vpop.f32.mrf.mxu2  ;;  %v2379_v62 = vpop.f32.mrf.mxu3 }
  0xba   :  { %v181_v63 = vpop.f32.mrf.mxu0  ;;  %v222_v56 = vpop.f32.mrf.mxu1 }
  0xbb   :  { %v2381_v0 = vadd.f32 %v181_v63, %v153_v59  ;;  %v2383_v26 = vadd.f32 %v222_v56, %v154_v55 }
  0xbd   :  { %3076 = vst [vmem:[#allocation42_spill] sm:$0xff] %v2381_v0 }
  0xbe   :  { %3077 = vst [vmem:[#allocation43_spill] sm:$0xff] %v2383_v26 }
  0xc1   :  { %v263_v54 = vpop.f32.mrf.mxu2  ;;  %v304_v58 = vpop.f32.mrf.mxu3 }
  0xc2   :  { %v2388_v53 = vadd.f32 %v263_v54, %v2385_v39  ;;  %v2390_v50 = vadd.f32 %v304_v58, %v156_v52  ;;  %v184_v51 = vpop.f32.mrf.mxu0  ;;  %v225_v49 = vpop.f32.mrf.mxu1 }
  0xc3   :  { %v2392_v48 = vadd.f32 %v184_v51, %v153_v59  ;;  %v2394_v46 = vadd.f32 %v225_v49, %v154_v55 }
  0xc4   :  { %3078 = vst [vmem:[#allocation44_spill] sm:$0xff] %v2388_v53 }
  0xc5   :  { %3079 = vst [vmem:[#allocation45_spill] sm:$0xff] %v2390_v50 }
  0xc6   :  { %3080 = vst [vmem:[#allocation46_spill] sm:$0xff] %v2392_v48 }
  0xc7   :  { %3081 = vst [vmem:[#allocation47_spill] sm:$0xff] %v2394_v46 }
  0xc9   :  { %v266_v63 = vpop.f32.mrf.mxu2  ;;  %v307_v0 = vpop.f32.mrf.mxu3 }
  0xca   :  { %v2397_v56 = vadd.f32 %v266_v63, %v2385_v39  ;;  %v2399_v26 = vadd.f32 %v307_v0, %v156_v52  ;;  %v187_v57 = vpop.f32.mrf.mxu0  ;;  %v228_v47 = vpop.f32.mrf.mxu1 }
  0xcb   :  { %v2401_v45 = vadd.f32 %v187_v57, %v153_v59  ;;  %v2403_v54 = vadd.f32 %v228_v47, %v154_v55 }
  0xcc   :  { %3082 = vst [vmem:[#allocation48_spill] sm:$0xff] %v2397_v56 }
  0xcd   :  { %3083 = vst [vmem:[#allocation49_spill] sm:$0xff] %v2399_v26 }
  0xce   :  { %3084 = vst [vmem:[#allocation50_spill] sm:$0xff] %v2401_v45 }
  0xcf   :  { %3085 = vst [vmem:[#allocation51_spill] sm:$0xff] %v2403_v54 }
  0xd1   :  { %v269_v58 = vpop.f32.mrf.mxu2  ;;  %v310_v53 = vpop.f32.mrf.mxu3 }
  0xd2   :  { %v2406_v51 = vadd.f32 %v269_v58, %v2385_v39  ;;  %v2408_v49 = vadd.f32 %v310_v53, %v156_v52  ;;  %v190_v46 = vpop.f32.mrf.mxu0  ;;  %v231_v48 = vpop.f32.mrf.mxu1 }
  0xd3   :  { %v2410_v50 = vadd.f32 %v190_v46, %v153_v59  ;;  %v2412_v63 = vadd.f32 %v231_v48, %v154_v55 }
  0xd4   :  { %3086 = vst [vmem:[#allocation52_spill] sm:$0xff] %v2406_v51 }
  0xd5   :  { %3087 = vst [vmem:[#allocation53_spill] sm:$0xff] %v2408_v49 }
  0xd6   :  { %3088 = vst [vmem:[#allocation54_spill] sm:$0xff] %v2410_v50 }
  0xd7   :  { %3089 = vst [vmem:[#allocation55_spill] sm:$0xff] %v2412_v63 }
  0xd9   :  { %v272_v0 = vpop.f32.mrf.mxu2  ;;  %v313_v56 = vpop.f32.mrf.mxu3 }
  0xda   :  { %v2415_v57 = vadd.f32 %v272_v0, %v2385_v39  ;;  %v2417_v47 = vadd.f32 %v313_v56, %v156_v52  ;;  %v193_v54 = vpop.f32.mrf.mxu0  ;;  %v234_v45 = vpop.f32.mrf.mxu1 }
  0xdb   :  { %v2419_v26 = vadd.f32 %v193_v54, %v153_v59  ;;  %v2421_v58 = vadd.f32 %v234_v45, %v154_v55 }
  0xdc   :  { %3090 = vst [vmem:[#allocation56_spill] sm:$0xff] %v2415_v57 }
  0xdd   :  { %3091 = vst [vmem:[#allocation57_spill] sm:$0xff] %v2417_v47 }
  0xde   :  { %3092 = vst [vmem:[#allocation58_spill] sm:$0xff] %v2419_v26 }
  0xdf   :  { %3093 = vst [vmem:[#allocation59_spill] sm:$0xff] %v2421_v58 }
  0xe1   :  { %v275_v53 = vpop.f32.mrf.mxu2  ;;  %v316_v51 = vpop.f32.mrf.mxu3 }
  0xe2   :  { %v2424_v46 = vadd.f32 %v275_v53, %v2385_v39  ;;  %v2426_v48 = vadd.f32 %v316_v51, %v156_v52  ;;  %v196_v63 = vpop.f32.mrf.mxu0  ;;  %v237_v50 = vpop.f32.mrf.mxu1  ;;  %v179_v51 = vadd.f32 %v178_v13, %v153_v59 }
  0xe3   :  { %v2428_v49 = vadd.f32 %v196_v63, %v153_v59  ;;  %v2430_v0 = vadd.f32 %v237_v50, %v154_v55 }
  0xe4   :  { %3094 = vst [vmem:[#allocation60_spill] sm:$0xff] %v2424_v46  ;;  %v220_v46 = vadd.f32 %v219_v60, %v154_v55 }
  0xe5   :  { %3095 = vst [vmem:[#allocation61_spill] sm:$0xff] %v2426_v48 }
  0xe6   :  { %3096 = vst [vmem:[#allocation62_spill] sm:$0xff] %v2428_v49 }
  0xe7   :  { %3097 = vst [vmem:[#allocation63_spill] sm:$0xff] %v2430_v0 }
  0xe9   :  { %v278_v56 = vpop.f32.mrf.mxu2  ;;  %v319_v57 = vpop.f32.mrf.mxu3 }
  0xea   :  { %v2433_v54 = vadd.f32 %v278_v56, %v2385_v39  ;;  %v2435_v45 = vadd.f32 %v319_v57, %v156_v52  ;;  %v199_v58 = vpop.f32.mrf.mxu0  ;;  %v240_v26 = vpop.f32.mrf.mxu1 }
  0xeb   :  { %v2437_v47 = vadd.f32 %v199_v58, %v153_v59  ;;  %v2439_v53 = vadd.f32 %v240_v26, %v154_v55  ;;  %v302_v58 = vadd.f32 %v2379_v62, %v156_v52 }
  0xec   :  { %3098 = vst [vmem:[#allocation64_spill] sm:$0xff] %v2433_v54 }
  0xed   :  { %3099 = vst [vmem:[#allocation65_spill] sm:$0xff] %v2435_v45 }
  0xee   :  { %3100 = vst [vmem:[#allocation66_spill] sm:$0xff] %v2437_v47 }
  0xef   :  { %3101 = vst [vmem:[#allocation67_spill] sm:$0xff] %v2439_v53 }
  0xf1   :  { %v281_v48 = vpop.f32.mrf.mxu2  ;;  %v322_v63 = vpop.f32.mrf.mxu3 }
  0xf2   :  { %v2442_v50 = vadd.f32 %v281_v48, %v2385_v39  ;;  %v2444_v0 = vadd.f32 %v322_v63, %v156_v52  ;;  %v442_v49 = vpop.f32.mrf.mxu0  ;;  %v462_v56 = vpop.f32.mrf.mxu1 }
  0xf3   :  { %v505_v54 = vadd.f32 %v442_v49, %v179_v51  ;;  %v506_v57 = vadd.f32 %v462_v56, %v220_v46  ;;  %v261_v49 = vadd.f32 %v2377_v61, %v2385_v39 }
  0xf4   :  { %3102 = vst [vmem:[#allocation68_spill] sm:$0xff] %v2442_v50 }
  0xf5   :  { %3103 = vst [vmem:[#allocation69_spill] sm:$0xff] %v2444_v0  ;;  %v1656_v45 = vmul.f32 -1.442695, %v505_v54  ;;  %v1657_v44 = vmul.f32 -1.442695, %v506_v57 }
  0xf7   :  { %1690 = vpow2.f32 %v1656_v45 }
  0xf8   :  { %1692 = vpow2.f32 %v1657_v44 }
  0xf9   :  { %v502_v26 = vpop.f32.mrf.mxu3  ;;  %v482_v63 = vpop.f32.mrf.mxu2 }
  0xfa   :  { %v508_v59 = vadd.f32 %v502_v26, %v302_v58  ;;  %v507_v45 = vadd.f32 %v482_v63, %v261_v49 }
  0xfc   :  { %v1658_v55 = vmul.f32 -1.442695, %v508_v59 }
  0xfd   :  { %v1691_v60 = vpop.eup %1690 }
  0xfe   :  { %v1693_v13 = vpop.eup %1692  ;;  %v512_v53 = vadd.f32 1.0, %v1691_v60  ;;  %1694 = vpow2.f32 %v1658_v55 }
  0xff   :  { %v531_v48 = vadd.f32 1.0, %v1693_v13 }
 0x100   :  { %1696 = vrcp.f32 %v512_v53  ;;  %v524_v57 = vand.u32 2147483648, %v512_v53  ;;  %v522_v59 = vand.u32 2147483647, %v512_v53  ;;  %vm518_vm2 = vweird.f32 %v512_v53 }
 0x101   :  { %1698 = vrcp.f32 %v531_v48  ;;  %v543_v58 = vand.u32 2147483648, %v531_v48  ;;  %v541_v60 = vand.u32 2147483647, %v531_v48  ;;  %vm537_vm3 = vweird.f32 %v531_v48 }
 0x102   :  { %v525_v39 = vor.u32 1.1754944e-38, %v524_v57  ;;  %vm523_vm5 = vcmp.eq.f32.partialorder %v522_v59, 8.507059e+37 }
 0x103   :  { %v544_v49 = vor.u32 1.1754944e-38, %v543_v58  ;;  %vm542_vm7 = vcmp.eq.f32.partialorder %v541_v60, 8.507059e+37 }
 0x104   :  { %v1695_v50 = vpop.eup %1694 }
 0x105   :  { %v551_v46 = vadd.f32 1.0, %v1695_v50 }
 0x106   :  { %v1697_v54 = vpop.eup %1696 }
 0x107   :  { %v1699_v62 = vpop.eup %1698  ;;  %v514_v44 = vmul.f32 %v1697_v54, %v512_v53  ;;  %1700 = vrcp.f32 %v551_v46  ;;  %vm519_vm0 = vweird.f32 %v1697_v54  ;;  %vm557_vm9 = vweird.f32 %v551_v46 }
 0x108   :  { %v533_v52 = vmul.f32 %v1699_v62, %v531_v48  ;;  %1702 = vtanh.f32 %v507_v45  ;;  %vm538_vm1 = vweird.f32 %v1699_v62  ;;  %vm520_vm4 = vmor %vm518_vm2, %vm519_vm0  ;;  %v563_v48 = vand.u32 2147483648, %v551_v46 }
 0x109   :  { %v515_v51 = vsub.f32 1.0, %v514_v44  ;;  %vm539_vm6 = vmor %vm537_vm3, %vm538_vm1 }
 0x10a   :  { %v534_v56 = vsub.f32 1.0, %v533_v52  ;;  %v564_v58 = vor.u32 1.1754944e-38, %v563_v48 }
 0x10b   :  { %v516_v26 = vmul.f32 %v1697_v54, %v515_v51 }
 0x10c   :  { %v535_v55 = vmul.f32 %v1699_v62, %v534_v56 }
 0x10d   :  { %v1701_v13 = vpop.eup %1700  ;;  %v517_v61 = vadd.f32 %v1697_v54, %v516_v26 }
 0x10e   :  { %v536_v50 = vadd.f32 %v1699_v62, %v535_v55  ;;  %v553_v63 = vmul.f32 %v1701_v13, %v551_v46  ;;  %v1703_v45 = vpop.eup %1702  ;;  %vm558_vm8 = vweird.f32 %v1701_v13 }
 0x10f   :  { %v521_v44 = vsel %vm520_vm4, %v1697_v54, %v517_v61  ;;  %v561_v54 = vand.u32 2147483647, %v551_v46  ;;  %vm559_vm10 = vmor %vm557_vm9, %vm558_vm8 }
 0x110   :  { %v526_v52 = vsel %vm523_vm5, %v525_v39, %v521_v44  ;;  %v540_v51 = vsel %vm539_vm6, %v1699_v62, %v536_v50  ;;  %v554_v0 = vsub.f32 1.0, %v553_v63  ;;  %v3133_v39 = vld [vmem:[#allocation44_spill] sm:$0xff] }
 0x111   :  { %v545_v56 = vsel %vm542_vm7, %v544_v49, %v540_v51  ;;  %v568_v47 = vmul.f32 %v1703_v45, %v526_v52  ;;  %vm562_vm11 = vcmp.eq.f32.partialorder %v561_v54, 8.507059e+37 }
 0x112   :  { %v567_v42 = vmul.f32 0.0, %v545_v56  ;;  %v555_v43 = vmul.f32 %v1701_v13, %v554_v0 }
 0x114   :  { %v2449_v26 = vadd.f32 %v568_v47, %v567_v42  ;;  %v556_v53 = vadd.f32 %v1701_v13, %v555_v43 }
 0x116   :  { %1704 = vtanh.f32 %v2449_v26  ;;  %v560_v57 = vsel %vm559_vm10, %v1701_v13, %v556_v53 }
 0x117   :  { %v565_v59 = vsel %vm562_vm11, %v564_v58, %v560_v57 }
 0x11c   :  { %v1705_v62 = vpop.eup %1704 }
 0x11d   :  { %v571_v55 = vmul.f32 %v1705_v62, %v565_v59 }
 0x11f   :  { %593 = vmatmul.f32.vlgmr.msra.gmra.mxu0 %v571_v55  ;;  %613 = vmatmul.f32.vlgmr.msra.gmra.mxu1 %v571_v55 }
 0x120   :  { %633 = vmatmul.f32.vlgmr.msra.gmra.mxu2 %v571_v55  ;;  %653 = vmatmul.f32.vlgmr.msra.gmra.mxu3 %v571_v55 }
 0x121   :  { %881 = vmatpush.msra.mxu0 %v2057_v1  ;;  %901 = vmatpush.msra.mxu1 %v2059_v2  ;;  %v3104_v1 = vld [vmem:[#allocation17_spill] sm:$0xff]  ;;  %v3105_v2 = vld [vmem:[#allocation16_spill] sm:$0xff] }
 0x122   :  { %921 = vmatpush.msra.mxu2 %v2063_v4  ;;  %941 = vmatpush.msra.mxu3 %v2061_v3  ;;  %v3106_v3 = vld [vmem:[#allocation18_spill] sm:$0xff]  ;;  %v3107_v4 = vld [vmem:[#allocation19_spill] sm:$0xff] }
 0x123   :  { %882 = vmatpush.msra.mxu0 %v2065_v5  ;;  %902 = vmatpush.msra.mxu1 %v2067_v6  ;;  %v3108_v5 = vld [vmem:[#allocation21_spill] sm:$0xff]  ;;  %v3109_v6 = vld [vmem:[#allocation20_spill] sm:$0xff] }
 0x124   :  { %922 = vmatpush.msra.mxu2 %v2073_v8  ;;  %942 = vmatpush.msra.mxu3 %v2071_v7  ;;  %v3110_v7 = vld [vmem:[#allocation22_spill] sm:$0xff]  ;;  %v3111_v8 = vld [vmem:[#allocation23_spill] sm:$0xff] }
 0x125   :  { %883 = vmatpush.msra.mxu0 %v2076_v9  ;;  %903 = vmatpush.msra.mxu1 %v2078_v10  ;;  %v3112_v9 = vld [vmem:[#allocation25_spill] sm:$0xff]  ;;  %v3113_v10 = vld [vmem:[#allocation24_spill] sm:$0xff] }
 0x126   :  { %923 = vmatpush.msra.mxu2 %v2085_v12  ;;  %943 = vmatpush.msra.mxu3 %v2083_v11  ;;  %v3114_v11 = vld [vmem:[#allocation26_spill] sm:$0xff]  ;;  %v3115_v12 = vld [vmem:[#allocation27_spill] sm:$0xff] }
 0x127   :  { %884 = vmatpush.msra.mxu0 %v2091_v14  ;;  %904 = vmatpush.msra.mxu1 %v2093_v15  ;;  %v3116_v14 = vld [vmem:[#allocation29_spill] sm:$0xff]  ;;  %v3117_v15 = vld [vmem:[#allocation28_spill] sm:$0xff] }
 0x128   :  { %924 = vmatpush.msra.mxu2 %v2099_v17  ;;  %944 = vmatpush.msra.mxu3 %v2097_v16  ;;  %v3118_v16 = vld [vmem:[#allocation30_spill] sm:$0xff]  ;;  %v3119_v17 = vld [vmem:[#allocation31_spill] sm:$0xff] }
 0x129   :  { %885 = vmatpush.msra.mxu0 %v2101_v18  ;;  %905 = vmatpush.msra.mxu1 %v2103_v19  ;;  %v3120_v18 = vld [vmem:[#allocation33_spill] sm:$0xff]  ;;  %v3121_v19 = vld [vmem:[#allocation32_spill] sm:$0xff] }
 0x12a   :  { %925 = vmatpush.msra.mxu2 %v2109_v21  ;;  %945 = vmatpush.msra.mxu3 %v2107_v20  ;;  %v3122_v20 = vld [vmem:[#allocation34_spill] sm:$0xff]  ;;  %v3123_v21 = vld [vmem:[#allocation35_spill] sm:$0xff] }
 0x12b   :  { %886 = vmatpush.msra.mxu0 %v2112_v22  ;;  %906 = vmatpush.msra.mxu1 %v2114_v23  ;;  %v3124_v22 = vld [vmem:[#allocation36_spill] sm:$0xff]  ;;  %v3125_v23 = vld [vmem:[#allocation37_spill] sm:$0xff] }
 0x12c   :  { %926 = vmatpush.msra.mxu2 %v2121_v25  ;;  %946 = vmatpush.msra.mxu3 %v2119_v24  ;;  %v3126_v24 = vld [vmem:[#allocation38_spill] sm:$0xff]  ;;  %v3127_v25 = vld [vmem:[#allocation39_spill] sm:$0xff] }
 0x12d   :  { %887 = vmatpush.msra.mxu0 %v2127_v27  ;;  %907 = vmatpush.msra.mxu1 %v2129_v28  ;;  %v3128_v27 = vld [vmem:[#allocation40_spill] sm:$0xff]  ;;  %v3129_v28 = vld [vmem:[#allocation41_spill] sm:$0xff] }
 0x12e   :  { %927 = vmatpush.msra.mxu2 %v2135_v30  ;;  %947 = vmatpush.msra.mxu3 %v2133_v29 }
 0x12f   :  { %888 = vmatpush.msra.mxu0 %v2137_v31  ;;  %908 = vmatpush.msra.mxu1 %v2139_v32  ;;  %v3130_v31 = vld [vmem:[#allocation42_spill] sm:$0xff] }
 0x130   :  { %928 = vmatpush.msra.mxu2 %v2145_v34  ;;  %948 = vmatpush.msra.mxu3 %v2143_v33  ;;  %v3131_v33 = vld [vmem:[#allocation43_spill] sm:$0xff] }
 0x131   :  { %889 = vmatpush.msra.mxu0 %v2148_v35  ;;  %909 = vmatpush.msra.mxu1 %v2150_v36 }
 0x132   :  { %929 = vmatpush.msra.mxu2 %v2157_v38  ;;  %949 = vmatpush.msra.mxu3 %v2155_v37  ;;  %v3132_v38 = vld [vmem:[#allocation45_spill] sm:$0xff] }
 0x133   :  { %890 = vmatpush.msra.mxu0 %v2163_v40  ;;  %910 = vmatpush.msra.mxu1 %v2165_v41 }
 0x134   :  { %930 = vmatpush.msra.mxu2 %v3104_v1  ;;  %950 = vmatpush.msra.mxu3 %v3105_v2 }
 0x135   :  { %891 = vmatpush.msra.mxu0 %v3106_v3  ;;  %911 = vmatpush.msra.mxu1 %v3107_v4 }
 0x136   :  { %931 = vmatpush.msra.mxu2 %v3108_v5  ;;  %951 = vmatpush.msra.mxu3 %v3109_v6 }
 0x137   :  { %892 = vmatpush.msra.mxu0 %v3110_v7  ;;  %912 = vmatpush.msra.mxu1 %v3111_v8 }
 0x138   :  { %932 = vmatpush.msra.mxu2 %v3112_v9  ;;  %952 = vmatpush.msra.mxu3 %v3113_v10 }
 0x139   :  { %893 = vmatpush.msra.mxu0 %v3114_v11  ;;  %913 = vmatpush.msra.mxu1 %v3115_v12 }
 0x13a   :  { %933 = vmatpush.msra.mxu2 %v3116_v14  ;;  %953 = vmatpush.msra.mxu3 %v3117_v15 }
 0x13b   :  { %894 = vmatpush.msra.mxu0 %v3118_v16  ;;  %914 = vmatpush.msra.mxu1 %v3119_v17 }
 0x13c   :  { %934 = vmatpush.msra.mxu2 %v3120_v18  ;;  %954 = vmatpush.msra.mxu3 %v3121_v19 }
 0x13d   :  { %895 = vmatpush.msra.mxu0 %v3122_v20  ;;  %915 = vmatpush.msra.mxu1 %v3123_v21 }
 0x13e   :  { %935 = vmatpush.msra.mxu2 %v3124_v22  ;;  %955 = vmatpush.msra.mxu3 %v3125_v23 }
 0x13f   :  { %896 = vmatpush.msra.mxu0 %v3126_v24  ;;  %916 = vmatpush.msra.mxu1 %v3127_v25 }
 0x140   :  { %936 = vmatpush.msra.mxu2 %v3128_v27  ;;  %956 = vmatpush.msra.mxu3 %v3129_v28 }
 0x19c   :  { %v594_v29 = vpop.f32.mrf.mxu0  ;;  %v614_v30 = vpop.f32.mrf.mxu1 }
 0x19d   :  { %v657_v32 = vadd.f32 %v594_v29, %v3130_v31  ;;  %v658_v34 = vadd.f32 %v614_v30, %v3131_v33  ;;  %v2527_v29 = vld [vmem:[#allocation8 + $0x1e8] sm:$0xff]  ;;  %v2530_v30 = vld [vmem:[#allocation8 + $0x1f0] sm:$0xff]  ;;  %v2533_v31 = vld [vmem:[#allocation8 + $0x1f8] sm:$0xff] }
 0x19e   :  { %v2539_v33 = vld [vmem:[#allocation8 + $0x1c8] sm:$0xff] }
 0x19f   :  { %v1659_v35 = vmul.f32 -1.442695, %v657_v32  ;;  %v1660_v36 = vmul.f32 -1.442695, %v658_v34  ;;  %v2536_v32 = vld [vmem:[#allocation8 + $0x1c0] sm:$0xff]  ;;  %v2542_v34 = vld [vmem:[#allocation8 + $0x1d0] sm:$0xff] }
 0x1a1   :  { %1706 = vpow2.f32 %v1659_v35  ;;  %v2545_v35 = vld [vmem:[#allocation8 + $0x1d8] sm:$0xff] }
 0x1a2   :  { %1708 = vpow2.f32 %v1660_v36  ;;  %v2548_v36 = vld [vmem:[#allocation8 + $0x1a0] sm:$0xff] }
 0x1a3   :  { %v654_v37 = vpop.f32.mrf.mxu3  ;;  %v634_v46 = vpop.f32.mrf.mxu2 }
 0x1a4   :  { %v660_v40 = vadd.f32 %v654_v37, %v3132_v38  ;;  %v659_v50 = vadd.f32 %v634_v46, %v3133_v39  ;;  %v2551_v37 = vld [vmem:[#allocation8 + $0x1a8] sm:$0xff]  ;;  %v2554_v38 = vld [vmem:[#allocation8 + $0x1b0] sm:$0xff] }
 0x1a5   :  { %v2575_v46 = vld [vmem:[#allocation8 + $0x168] sm:$0xff] }
 0x1a6   :  { %v1661_v41 = vmul.f32 -1.442695, %v660_v40  ;;  %v2557_v40 = vld [vmem:[#allocation8 + $0x1b8] sm:$0xff]  ;;  %v2587_v39 = vld [vmem:[#allocation8 + $0x148] sm:$0xff] }
 0x1a7   :  { %v1707_v42 = vpop.eup %1706 }
 0x1a8   :  { %v1709_v43 = vpop.eup %1708  ;;  %v664_v47 = vadd.f32 1.0, %v1707_v42  ;;  %1710 = vpow2.f32 %v1661_v41  ;;  %v2560_v41 = vld [vmem:[#allocation8 + $0x180] sm:$0xff]  ;;  %v2563_v42 = vld [vmem:[#allocation8 + $0x188] sm:$0xff] }
 0x1a9   :  { %v683_v0 = vadd.f32 1.0, %v1709_v43  ;;  %v2566_v43 = vld [vmem:[#allocation8 + $0x190] sm:$0xff] }
 0x1aa   :  { %1712 = vrcp.f32 %v664_v47  ;;  %v676_v51 = vand.u32 2147483648, %v664_v47  ;;  %v674_v48 = vand.u32 2147483647, %v664_v47  ;;  %vm670_vm14 = vweird.f32 %v664_v47 }
 0x1ab   :  { %1714 = vrcp.f32 %v683_v0  ;;  %v695_v56 = vand.u32 2147483648, %v683_v0  ;;  %v693_v57 = vand.u32 2147483647, %v683_v0  ;;  %vm689_vm15 = vweird.f32 %v683_v0 }
 0x1ac   :  { %v677_v59 = vor.u32 1.1754944e-38, %v676_v51  ;;  %vm675_vm2 = vcmp.eq.f32.partialorder %v674_v48, 8.507059e+37  ;;  %v2608_v51 = vld [vmem:[#allocation8 + $0x100] sm:$0xff]  ;;  %v2617_v48 = vld [vmem:[#allocation8 + $0x118] sm:$0xff] }
 0x1ad   :  { %v696_v2 = vor.u32 1.1754944e-38, %v695_v56  ;;  %vm694_vm3 = vcmp.eq.f32.partialorder %v693_v57, 8.507059e+37  ;;  %v2611_v56 = vld [vmem:[#allocation8 + $0x108] sm:$0xff] }
 0x1ae   :  { %v1711_v60 = vpop.eup %1710  ;;  %v2623_v57 = vld [vmem:[#allocation8 + $0xe8] sm:$0xff] }
 0x1af   :  { %v703_v13 = vadd.f32 1.0, %v1711_v60  ;;  %v2578_v60 = vld [vmem:[#allocation8 + $0x170] sm:$0xff] }
 0x1b0   :  { %v1713_v61 = vpop.eup %1712 }
 0x1b1   :  { %v1715_v63 = vpop.eup %1714  ;;  %v666_v49 = vmul.f32 %v1713_v61, %v664_v47  ;;  %1716 = vrcp.f32 %v703_v13  ;;  %vm671_vm12 = vweird.f32 %v1713_v61  ;;  %v715_v15 = vand.u32 2147483648, %v703_v13  ;;  %v2569_v47 = vld [vmem:[#allocation8 + $0x198] sm:$0xff] }
 0x1b2   :  { %v685_v44 = vmul.f32 %v1715_v63, %v683_v0  ;;  %1718 = vtanh.f32 %v659_v50  ;;  %vm690_vm13 = vweird.f32 %v1715_v63  ;;  %vm672_vm0 = vmor %vm670_vm14, %vm671_vm12  ;;  %vm709_vm5 = vweird.f32 %v703_v13  ;;  %v2572_v0 = vld [vmem:[#allocation8 + $0x160] sm:$0xff]  ;;  %v2590_v50 = vld [vmem:[#allocation8 + $0x150] sm:$0xff] }
 0x1b3   :  { %v667_v45 = vsub.f32 1.0, %v666_v49  ;;  %vm691_vm1 = vmor %vm689_vm15, %vm690_vm13  ;;  %v713_v16 = vand.u32 2147483647, %v703_v13  ;;  %v716_v18 = vor.u32 1.1754944e-38, %v715_v15  ;;  %v2596_v49 = vld [vmem:[#allocation8 + $0x120] sm:$0xff]  ;;  %v2674_v15 = vld [vmem:[#allocation8 + $0x70] sm:$0xff] }
 0x1b4   :  { %v686_v52 = vsub.f32 1.0, %v685_v44  ;;  %v2599_v44 = vld [vmem:[#allocation8 + $0x128] sm:$0xff]  ;;  %3146 = vst [vmem:[#allocation29_spill] sm:$0xff] %v2674_v15 }
 0x1b5   :  { %v668_v53 = vmul.f32 %v1713_v61, %v667_v45  ;;  %vm714_vm7 = vcmp.eq.f32.partialorder %v713_v16, 8.507059e+37  ;;  %v2602_v45 = vld [vmem:[#allocation8 + $0x130] sm:$0xff]  ;;  %v2677_v16 = vld [vmem:[#allocation8 + $0x78] sm:$0xff] }
 0x1b6   :  { %v687_v54 = vmul.f32 %v1715_v63, %v686_v52  ;;  %v2605_v52 = vld [vmem:[#allocation8 + $0x138] sm:$0xff]  ;;  %3147 = vst [vmem:[#allocation28_spill] sm:$0xff] %v2677_v16 }
 0x1b7   :  { %v1717_v58 = vpop.eup %1716  ;;  %v669_v62 = vadd.f32 %v1713_v61, %v668_v53  ;;  %v2614_v53 = vld [vmem:[#allocation8 + $0x110] sm:$0xff] }
 0x1b8   :  { %v688_v55 = vadd.f32 %v1715_v63, %v687_v54  ;;  %v705_v1 = vmul.f32 %v1717_v58, %v703_v13  ;;  %v1719_v4 = vpop.eup %1718  ;;  %vm710_vm4 = vweird.f32 %v1717_v58  ;;  %v2581_v13 = vld [vmem:[#allocation8 + $0x178] sm:$0xff]  ;;  %v2620_v54 = vld [vmem:[#allocation8 + $0xe0] sm:$0xff] }
 0x1b9   :  { %v673_v3 = vsel %vm672_vm0, %v1713_v61, %v669_v62  ;;  %vm711_vm6 = vmor %vm709_vm5, %vm710_vm4  ;;  %v2584_v61 = vld [vmem:[#allocation8 + $0x140] sm:$0xff]  ;;  %v2629_v62 = vld [vmem:[#allocation8 + $0xf8] sm:$0xff] }
 0x1ba   :  { %v678_v5 = vsel %vm675_vm2, %v677_v59, %v673_v3  ;;  %v692_v6 = vsel %vm691_vm1, %v1715_v63, %v688_v55  ;;  %v706_v7 = vsub.f32 1.0, %v705_v1  ;;  %v2593_v63 = vld [vmem:[#allocation8 + $0x158] sm:$0xff]  ;;  %v2632_v59 = vld [vmem:[#allocation8 + $0xc0] sm:$0xff]  ;;  %v2635_v55 = vld [vmem:[#allocation8 + $0xc8] sm:$0xff] }
 0x1bb   :  { %v697_v8 = vsel %vm694_vm3, %v696_v2, %v692_v6  ;;  %v720_v9 = vmul.f32 %v1719_v4, %v678_v5  ;;  %v2638_v1 = vld [vmem:[#allocation8 + $0xd0] sm:$0xff]  ;;  %v2641_v2 = vld [vmem:[#allocation8 + $0xd8] sm:$0xff]  ;;  %v2644_v3 = vld [vmem:[#allocation8 + $0xa0] sm:$0xff] }
 0x1bc   :  { %v719_v10 = vmul.f32 %v697_v8, %v2449_v26  ;;  %v707_v11 = vmul.f32 %v1717_v58, %v706_v7  ;;  %v2524_v26 = vld [vmem:[#allocation8 + $0x1e0] sm:$0xff]  ;;  %3134 = vst [vmem:[#allocation17_spill] sm:$0xff] %v2638_v1  ;;  %v2647_v4 = vld [vmem:[#allocation8 + $0xa8] sm:$0xff]  ;;  %v2650_v5 = vld [vmem:[#allocation8 + $0xb0] sm:$0xff] }
 0x1bd   :  { %3135 = vst [vmem:[#allocation16_spill] sm:$0xff] %v2641_v2  ;;  %v2653_v6 = vld [vmem:[#allocation8 + $0xb8] sm:$0xff]  ;;  %v2656_v7 = vld [vmem:[#allocation8 + $0x80] sm:$0xff]  ;;  %v2659_v8 = vld [vmem:[#allocation8 + $0x88] sm:$0xff] }
 0x1be   :  { %v2521_v12 = vadd.f32 %v720_v9, %v719_v10  ;;  %v708_v14 = vadd.f32 %v1717_v58, %v707_v11  ;;  %3136 = vst [vmem:[#allocation18_spill] sm:$0xff] %v2644_v3  ;;  %v2662_v9 = vld [vmem:[#allocation8 + $0x90] sm:$0xff]  ;;  %v2665_v10 = vld [vmem:[#allocation8 + $0x98] sm:$0xff]  ;;  %v2668_v11 = vld [vmem:[#allocation8 + $0x60] sm:$0xff] }
 0x1bf   :  { %3137 = vst [vmem:[#allocation19_spill] sm:$0xff] %v2647_v4 }
 0x1c0   :  { %1720 = vtanh.f32 %v2521_v12  ;;  %v712_v17 = vsel %vm711_vm6, %v1717_v58, %v708_v14  ;;  %v2626_v58 = vld [vmem:[#allocation8 + $0xf0] sm:$0xff]  ;;  %3138 = vst [vmem:[#allocation21_spill] sm:$0xff] %v2650_v5  ;;  %v2671_v14 = vld [vmem:[#allocation8 + $0x68] sm:$0xff] }
 0x1c1   :  { %v717_v20 = vsel %vm714_vm7, %v716_v18, %v712_v17  ;;  %3139 = vst [vmem:[#allocation20_spill] sm:$0xff] %v2653_v6  ;;  %v2680_v17 = vld [vmem:[#allocation8 + $0x40] sm:$0xff]  ;;  %v2683_v18 = vld [vmem:[#allocation8 + $0x48] sm:$0xff] }
 0x1c2   :  { %3140 = vst [vmem:[#allocation22_spill] sm:$0xff] %v2656_v7 }
 0x1c3   :  { %3141 = vst [vmem:[#allocation23_spill] sm:$0xff] %v2659_v8 }
 0x1c4   :  { %3142 = vst [vmem:[#allocation25_spill] sm:$0xff] %v2662_v9 }
 0x1c5   :  { %3143 = vst [vmem:[#allocation24_spill] sm:$0xff] %v2665_v10 }
 0x1c6   :  { %v1721_v19 = vpop.eup %1720  ;;  %3144 = vst [vmem:[#allocation26_spill] sm:$0xff] %v2668_v11 }
 0x1c7   :  { %v723_v21 = vmul.f32 %v1721_v19, %v717_v20  ;;  %3145 = vst [vmem:[#allocation27_spill] sm:$0xff] %v2671_v14  ;;  %v2686_v19 = vld [vmem:[#allocation8 + $0x50] sm:$0xff]  ;;  %v2689_v20 = vld [vmem:[#allocation8 + $0x58] sm:$0xff] }
 0x1c8   :  { %3148 = vst [vmem:[#allocation30_spill] sm:$0xff] %v2680_v17 }
 0x1c9   :  { %745 = vmatmul.f32.vlgmr.msrb.gmra.mxu0 %v723_v21  ;;  %765 = vmatmul.f32.vlgmr.msrb.gmra.mxu1 %v723_v21  ;;  %3149 = vst [vmem:[#allocation31_spill] sm:$0xff] %v2683_v18 }
 0x1ca   :  { %785 = vmatmul.f32.vlgmr.msrb.gmra.mxu2 %v723_v21  ;;  %805 = vmatmul.f32.vlgmr.msrb.gmra.mxu3 %v723_v21  ;;  %3150 = vst [vmem:[#allocation33_spill] sm:$0xff] %v2686_v19  ;;  %v2692_v21 = vld [vmem:[#allocation8 + $0x20] sm:$0xff] }
 0x1cb   :  { %1033 = vmatpush.msrb.mxu0 %v2524_v26  ;;  %1053 = vmatpush.msrb.mxu1 %v2527_v29  ;;  %3151 = vst [vmem:[#allocation32_spill] sm:$0xff] %v2689_v20 }
 0x1cc   :  { %1073 = vmatpush.msrb.mxu2 %v2530_v30  ;;  %1093 = vmatpush.msrb.mxu3 %v2533_v31  ;;  %3152 = vst [vmem:[#allocation34_spill] sm:$0xff] %v2692_v21 }
 0x1cd   :  { %1034 = vmatpush.msrb.mxu0 %v2536_v32  ;;  %1054 = vmatpush.msrb.mxu1 %v2539_v33 }
 0x1ce   :  { %1074 = vmatpush.msrb.mxu2 %v2542_v34  ;;  %1094 = vmatpush.msrb.mxu3 %v2545_v35 }
 0x1cf   :  { %1035 = vmatpush.msrb.mxu0 %v2548_v36  ;;  %1055 = vmatpush.msrb.mxu1 %v2551_v37 }
 0x1d0   :  { %1075 = vmatpush.msrb.mxu2 %v2554_v38  ;;  %1095 = vmatpush.msrb.mxu3 %v2557_v40 }
 0x1d1   :  { %1036 = vmatpush.msrb.mxu0 %v2560_v41  ;;  %1056 = vmatpush.msrb.mxu1 %v2563_v42 }
 0x1d2   :  { %1076 = vmatpush.msrb.mxu2 %v2566_v43  ;;  %1096 = vmatpush.msrb.mxu3 %v2569_v47 }
 0x1d3   :  { %1037 = vmatpush.msrb.mxu0 %v2572_v0  ;;  %1057 = vmatpush.msrb.mxu1 %v2575_v46 }
 0x1d4   :  { %1077 = vmatpush.msrb.mxu2 %v2578_v60  ;;  %1097 = vmatpush.msrb.mxu3 %v2581_v13 }
 0x1d5   :  { %1038 = vmatpush.msrb.mxu0 %v2584_v61  ;;  %1058 = vmatpush.msrb.mxu1 %v2587_v39 }
 0x1d6   :  { %1078 = vmatpush.msrb.mxu2 %v2590_v50  ;;  %1098 = vmatpush.msrb.mxu3 %v2593_v63 }
 0x1d7   :  { %1039 = vmatpush.msrb.mxu0 %v2596_v49  ;;  %1059 = vmatpush.msrb.mxu1 %v2599_v44 }
 0x1d8   :  { %1079 = vmatpush.msrb.mxu2 %v2602_v45  ;;  %1099 = vmatpush.msrb.mxu3 %v2605_v52 }
 0x1d9   :  { %1040 = vmatpush.msrb.mxu0 %v2608_v51  ;;  %1060 = vmatpush.msrb.mxu1 %v2611_v56 }
 0x1da   :  { %1080 = vmatpush.msrb.mxu2 %v2614_v53  ;;  %1100 = vmatpush.msrb.mxu3 %v2617_v48 }
 0x1db   :  { %1041 = vmatpush.msrb.mxu0 %v2620_v54  ;;  %1061 = vmatpush.msrb.mxu1 %v2623_v57 }
 0x1dc   :  { %1081 = vmatpush.msrb.mxu2 %v2626_v58  ;;  %1101 = vmatpush.msrb.mxu3 %v2629_v62 }
 0x1dd   :  { %1042 = vmatpush.msrb.mxu0 %v2632_v59  ;;  %1062 = vmatpush.msrb.mxu1 %v2635_v55 }
 0x1de   :  { %1082 = vmatpush.msrb.mxu2 %v2638_v1  ;;  %1102 = vmatpush.msrb.mxu3 %v2641_v2 }
 0x1df   :  { %1043 = vmatpush.msrb.mxu0 %v2644_v3  ;;  %1063 = vmatpush.msrb.mxu1 %v2647_v4 }
 0x1e0   :  { %1083 = vmatpush.msrb.mxu2 %v2650_v5  ;;  %1103 = vmatpush.msrb.mxu3 %v2653_v6 }
 0x1e1   :  { %1044 = vmatpush.msrb.mxu0 %v2656_v7  ;;  %1064 = vmatpush.msrb.mxu1 %v2659_v8 }
 0x1e2   :  { %1084 = vmatpush.msrb.mxu2 %v2662_v9  ;;  %1104 = vmatpush.msrb.mxu3 %v2665_v10 }
 0x1e3   :  { %1045 = vmatpush.msrb.mxu0 %v2668_v11  ;;  %1065 = vmatpush.msrb.mxu1 %v2671_v14 }
 0x1e4   :  { %1085 = vmatpush.msrb.mxu2 %v2674_v15  ;;  %1105 = vmatpush.msrb.mxu3 %v2677_v16  ;;  %v2695_v16 = vld [vmem:[#allocation8 + $0x28] sm:$0xff] }
 0x1e5   :  { %1046 = vmatpush.msrb.mxu0 %v2680_v17  ;;  %1066 = vmatpush.msrb.mxu1 %v2683_v18  ;;  %3153 = vst [vmem:[#allocation35_spill] sm:$0xff] %v2695_v16  ;;  %v3154_v18 = vld [vmem:[#allocation46_spill] sm:$0xff]  ;;  %v3155_v17 = vld [vmem:[#allocation47_spill] sm:$0xff] }
 0x1e6   :  { %1086 = vmatpush.msrb.mxu2 %v2686_v19  ;;  %1106 = vmatpush.msrb.mxu3 %v2689_v20 }
 0x1e7   :  { %1047 = vmatpush.msrb.mxu0 %v2692_v21  ;;  %1067 = vmatpush.msrb.mxu1 %v2695_v16 }
 0x1e8   :  { %1087 = vmatpush.msrb.mxu2 %v3124_v22  ;;  %1107 = vmatpush.msrb.mxu3 %v3125_v23  ;;  %v3156_v23 = vld [vmem:[#allocation49_spill] sm:$0xff] }
 0x1e9   :  { %1048 = vmatpush.msrb.mxu0 %v3126_v24  ;;  %1068 = vmatpush.msrb.mxu1 %v3127_v25 }
 0x1ea   :  { %1088 = vmatpush.msrb.mxu2 %v3128_v27  ;;  %1108 = vmatpush.msrb.mxu3 %v3129_v28 }
 0x246   :  { %v746_v20 = vpop.f32.mrf.mxu0  ;;  %v766_v19 = vpop.f32.mrf.mxu1 }
 0x247   :  { %v809_v21 = vadd.f32 %v746_v20, %v3154_v18  ;;  %v810_v15 = vadd.f32 %v766_v19, %v3155_v17  ;;  %v3157_v17 = vld [vmem:[#allocation48_spill] sm:$0xff] }
 0x249   :  { %v1662_v14 = vmul.f32 -1.442695, %v809_v21  ;;  %v1663_v16 = vmul.f32 -1.442695, %v810_v15 }
 0x24b   :  { %1722 = vpow2.f32 %v1662_v14 }
 0x24c   :  { %1724 = vpow2.f32 %v1663_v16 }
 0x24d   :  { %v806_v22 = vpop.f32.mrf.mxu3  ;;  %v786_v28 = vpop.f32.mrf.mxu2 }
 0x24e   :  { %v812_v11 = vadd.f32 %v806_v22, %v3156_v23  ;;  %v811_v19 = vadd.f32 %v786_v28, %v3157_v17 }
 0x250   :  { %v1664_v24 = vmul.f32 -1.442695, %v812_v11 }
 0x251   :  { %v1723_v10 = vpop.eup %1722 }
 0x252   :  { %v1725_v25 = vpop.eup %1724  ;;  %v816_v9 = vadd.f32 1.0, %v1723_v10  ;;  %1726 = vpow2.f32 %v1664_v24 }
 0x253   :  { %v835_v27 = vadd.f32 1.0, %v1725_v25 }
 0x254   :  { %1728 = vrcp.f32 %v816_v9  ;;  %v828_v11 = vand.u32 2147483648, %v816_v9  ;;  %v826_v24 = vand.u32 2147483647, %v816_v9  ;;  %vm822_vm10 = vweird.f32 %v816_v9 }
 0x255   :  { %1730 = vrcp.f32 %v835_v27  ;;  %v847_v23 = vand.u32 2147483648, %v835_v27  ;;  %v845_v7 = vand.u32 2147483647, %v835_v27  ;;  %vm841_vm11 = vweird.f32 %v835_v27 }
 0x256   :  { %v829_v28 = vor.u32 1.1754944e-38, %v828_v11  ;;  %vm827_vm14 = vcmp.eq.f32.partialorder %v826_v24, 8.507059e+37 }
 0x257   :  { %vm846_vm15 = vcmp.eq.f32.partialorder %v845_v7, 8.507059e+37 }
 0x258   :  { %v1727_v8 = vpop.eup %1726 }
 0x259   :  { %v855_v18 = vadd.f32 1.0, %v1727_v8 }
 0x25a   :  { %v1729_v20 = vpop.eup %1728 }
 0x25b   :  { %v1731_v15 = vpop.eup %1730  ;;  %v818_v14 = vmul.f32 %v1729_v20, %v816_v9  ;;  %1732 = vrcp.f32 %v855_v18  ;;  %vm823_vm8 = vweird.f32 %v1729_v20  ;;  %v867_v11 = vand.u32 2147483648, %v855_v18 }
 0x25c   :  { %v837_v16 = vmul.f32 %v1731_v15, %v835_v27  ;;  %1734 = vtanh.f32 %v811_v19  ;;  %vm842_vm9 = vweird.f32 %v1731_v15  ;;  %vm824_vm12 = vmor %vm822_vm10, %vm823_vm8  ;;  %vm861_vm1 = vweird.f32 %v855_v18 }
 0x25d   :  { %v819_v21 = vsub.f32 1.0, %v818_v14  ;;  %vm843_vm13 = vmor %vm841_vm11, %vm842_vm9  ;;  %v848_v14 = vor.u32 1.1754944e-38, %v847_v23  ;;  %v868_v24 = vor.u32 1.1754944e-38, %v867_v11  ;;  %v3176_v11 = vld [vmem:[#allocation34_spill] sm:$0xff] }
 0x25e   :  { %v838_v22 = vsub.f32 1.0, %v837_v16 }
 0x25f   :  { %v820_v10 = vmul.f32 %v1729_v20, %v819_v21 }
 0x260   :  { %v839_v25 = vmul.f32 %v1731_v15, %v838_v22 }
 0x261   :  { %v1733_v6 = vpop.eup %1732  ;;  %v821_v8 = vadd.f32 %v1729_v20, %v820_v10 }
 0x262   :  { %v840_v17 = vadd.f32 %v1731_v15, %v839_v25  ;;  %v857_v5 = vmul.f32 %v1733_v6, %v855_v18  ;;  %v1735_v19 = vpop.eup %1734  ;;  %vm862_vm0 = vweird.f32 %v1733_v6  ;;  %v3165_v25 = vld [vmem:[#allocation23_spill] sm:$0xff] }
 0x263   :  { %v825_v16 = vsel %vm824_vm12, %v1729_v20, %v821_v8  ;;  %v865_v20 = vand.u32 2147483647, %v855_v18  ;;  %vm863_vm2 = vmor %vm861_vm1, %vm862_vm0  ;;  %v3164_v18 = vld [vmem:[#allocation22_spill] sm:$0xff]  ;;  %v3166_v8 = vld [vmem:[#allocation25_spill] sm:$0xff] }
 0x264   :  { %v830_v4 = vsel %vm827_vm14, %v829_v28, %v825_v16  ;;  %v844_v21 = vsel %vm843_vm13, %v1731_v15, %v840_v17  ;;  %v858_v3 = vsub.f32 1.0, %v857_v5  ;;  %v3167_v28 = vld [vmem:[#allocation24_spill] sm:$0xff]  ;;  %v3168_v17 = vld [vmem:[#allocation26_spill] sm:$0xff]  ;;  %v3170_v16 = vld [vmem:[#allocation29_spill] sm:$0xff] }
 0x265   :  { %v849_v22 = vsel %vm846_vm15, %v848_v14, %v844_v21  ;;  %v872_v2 = vmul.f32 %v1735_v19, %v830_v4  ;;  %vm866_vm3 = vcmp.eq.f32.partialorder %v865_v20, 8.507059e+37  ;;  %v3162_v4 = vld [vmem:[#allocation21_spill] sm:$0xff]  ;;  %v3169_v14 = vld [vmem:[#allocation27_spill] sm:$0xff]  ;;  %v3171_v19 = vld [vmem:[#allocation28_spill] sm:$0xff] }
 0x266   :  { %v871_v1 = vmul.f32 %v849_v22, %v2521_v12  ;;  %v859_v10 = vmul.f32 %v1733_v6, %v858_v3  ;;  %v3158_v12 = vld [vmem:[#allocation17_spill] sm:$0xff]  ;;  %v3161_v3 = vld [vmem:[#allocation19_spill] sm:$0xff]  ;;  %v3172_v21 = vld [vmem:[#allocation30_spill] sm:$0xff] }
 0x267   :  { %v3173_v22 = vld [vmem:[#allocation31_spill] sm:$0xff] }
 0x268   :  { %v2709_v9 = vadd.f32 %v872_v2, %v871_v1  ;;  %v860_v27 = vadd.f32 %v1733_v6, %v859_v10  ;;  %v3159_v1 = vld [vmem:[#allocation16_spill] sm:$0xff]  ;;  %v3160_v2 = vld [vmem:[#allocation18_spill] sm:$0xff]  ;;  %v3174_v10 = vld [vmem:[#allocation33_spill] sm:$0xff] }
 0x269   :  { %v3177_v20 = vld [vmem:[#allocation35_spill] sm:$0xff] }
 0x26a   :  { %1736 = vtanh.f32 %v2709_v9  ;;  %v864_v23 = vsel %vm863_vm2, %v1733_v6, %v860_v27  ;;  %v3163_v6 = vld [vmem:[#allocation20_spill] sm:$0xff] }
 0x26b   :  { %v869_v5 = vsel %vm866_vm3, %v868_v24, %v864_v23  ;;  %v3175_v27 = vld [vmem:[#allocation32_spill] sm:$0xff]  ;;  %v2773_v24 = vld [vmem:[#allocation8 + $0x38] sm:$0xff] }
 0x26c   :  { %v2770_v23 = vld [vmem:[#allocation8 + $0x30] sm:$0xff]  ;;  %3179 = vst [vmem:[#allocation37_spill] sm:$0xff] %v2773_v24 }
 0x26d   :  { %3178 = vst [vmem:[#allocation36_spill] sm:$0xff] %v2770_v23 }
 0x270   :  { %v1737_v7 = vpop.eup %1736 }
 0x271   :  { %v875_v15 = vmul.f32 %v1737_v7, %v869_v5  ;;  %v2776_v7 = vld [vmem:[#allocation8] sm:$0xff]  ;;  %v2779_v5 = vld [vmem:[#allocation8 + $0x8] sm:$0xff] }
 0x272   :  { %3180 = vst [vmem:[#allocation38_spill] sm:$0xff] %v2776_v7 }
 0x273   :  { %897 = vmatmul.f32.vlgmr.msra.gmra.mxu0 %v875_v15  ;;  %917 = vmatmul.f32.vlgmr.msra.gmra.mxu1 %v875_v15  ;;  %3181 = vst [vmem:[#allocation39_spill] sm:$0xff] %v2779_v5 }
 0x274   :  { %937 = vmatmul.f32.vlgmr.msra.gmra.mxu2 %v875_v15  ;;  %957 = vmatmul.f32.vlgmr.msra.gmra.mxu3 %v875_v15  ;;  %v2782_v15 = vld [vmem:[#allocation8 + $0x10] sm:$0xff] }
 0x275   :  { %1185 = vmatpush.msra.mxu0 %v2524_v26  ;;  %1205 = vmatpush.msra.mxu1 %v2527_v29  ;;  %3182 = vst [vmem:[#allocation40_spill] sm:$0xff] %v2782_v15 }
 0x276   :  { %1225 = vmatpush.msra.mxu2 %v2530_v30  ;;  %1245 = vmatpush.msra.mxu3 %v2533_v31 }
 0x277   :  { %1186 = vmatpush.msra.mxu0 %v2536_v32  ;;  %1206 = vmatpush.msra.mxu1 %v2539_v33 }
 0x278   :  { %1226 = vmatpush.msra.mxu2 %v2542_v34  ;;  %1246 = vmatpush.msra.mxu3 %v2545_v35 }
 0x279   :  { %1187 = vmatpush.msra.mxu0 %v2548_v36  ;;  %1207 = vmatpush.msra.mxu1 %v2551_v37 }
 0x27a   :  { %1227 = vmatpush.msra.mxu2 %v2554_v38  ;;  %1247 = vmatpush.msra.mxu3 %v2557_v40 }
 0x27b   :  { %1188 = vmatpush.msra.mxu0 %v2560_v41  ;;  %1208 = vmatpush.msra.mxu1 %v2563_v42 }
 0x27c   :  { %1228 = vmatpush.msra.mxu2 %v2566_v43  ;;  %1248 = vmatpush.msra.mxu3 %v2569_v47 }
 0x27d   :  { %1189 = vmatpush.msra.mxu0 %v2572_v0  ;;  %1209 = vmatpush.msra.mxu1 %v2575_v46 }
 0x27e   :  { %1229 = vmatpush.msra.mxu2 %v2578_v60  ;;  %1249 = vmatpush.msra.mxu3 %v2581_v13 }
 0x27f   :  { %1190 = vmatpush.msra.mxu0 %v2584_v61  ;;  %1210 = vmatpush.msra.mxu1 %v2587_v39 }
 0x280   :  { %1230 = vmatpush.msra.mxu2 %v2590_v50  ;;  %1250 = vmatpush.msra.mxu3 %v2593_v63 }
 0x281   :  { %1191 = vmatpush.msra.mxu0 %v2596_v49  ;;  %1211 = vmatpush.msra.mxu1 %v2599_v44 }
 0x282   :  { %1231 = vmatpush.msra.mxu2 %v2602_v45  ;;  %1251 = vmatpush.msra.mxu3 %v2605_v52 }
 0x283   :  { %1192 = vmatpush.msra.mxu0 %v2608_v51  ;;  %1212 = vmatpush.msra.mxu1 %v2611_v56 }
 0x284   :  { %1232 = vmatpush.msra.mxu2 %v2614_v53  ;;  %1252 = vmatpush.msra.mxu3 %v2617_v48 }
 0x285   :  { %1193 = vmatpush.msra.mxu0 %v2620_v54  ;;  %1213 = vmatpush.msra.mxu1 %v2623_v57 }
 0x286   :  { %1233 = vmatpush.msra.mxu2 %v2626_v58  ;;  %1253 = vmatpush.msra.mxu3 %v2629_v62 }
 0x287   :  { %1194 = vmatpush.msra.mxu0 %v2632_v59  ;;  %1214 = vmatpush.msra.mxu1 %v2635_v55 }
 0x288   :  { %1234 = vmatpush.msra.mxu2 %v3158_v12  ;;  %1254 = vmatpush.msra.mxu3 %v3159_v1 }
 0x289   :  { %1195 = vmatpush.msra.mxu0 %v3160_v2  ;;  %1215 = vmatpush.msra.mxu1 %v3161_v3 }
 0x28a   :  { %1235 = vmatpush.msra.mxu2 %v3162_v4  ;;  %1255 = vmatpush.msra.mxu3 %v3163_v6 }
 0x28b   :  { %1196 = vmatpush.msra.mxu0 %v3164_v18  ;;  %1216 = vmatpush.msra.mxu1 %v3165_v25 }
 0x28c   :  { %1236 = vmatpush.msra.mxu2 %v3166_v8  ;;  %1256 = vmatpush.msra.mxu3 %v3167_v28 }
 0x28d   :  { %1197 = vmatpush.msra.mxu0 %v3168_v17  ;;  %1217 = vmatpush.msra.mxu1 %v3169_v14 }
 0x28e   :  { %1237 = vmatpush.msra.mxu2 %v3170_v16  ;;  %1257 = vmatpush.msra.mxu3 %v3171_v19 }
 0x28f   :  { %1198 = vmatpush.msra.mxu0 %v3172_v21  ;;  %1218 = vmatpush.msra.mxu1 %v3173_v22 }
 0x290   :  { %1238 = vmatpush.msra.mxu2 %v3174_v10  ;;  %1258 = vmatpush.msra.mxu3 %v3175_v27  ;;  %v3184_v27 = vld [vmem:[#allocation50_spill] sm:$0xff]  ;;  %v3185_v10 = vld [vmem:[#allocation51_spill] sm:$0xff] }
 0x291   :  { %1199 = vmatpush.msra.mxu0 %v3176_v11  ;;  %1219 = vmatpush.msra.mxu1 %v3177_v20  ;;  %v2785_v20 = vld [vmem:[#allocation8 + $0x18] sm:$0xff] }
 0x292   :  { %1239 = vmatpush.msra.mxu2 %v2770_v23  ;;  %1259 = vmatpush.msra.mxu3 %v2773_v24  ;;  %3183 = vst [vmem:[#allocation41_spill] sm:$0xff] %v2785_v20 }
 0x293   :  { %1200 = vmatpush.msra.mxu0 %v2776_v7  ;;  %1220 = vmatpush.msra.mxu1 %v2779_v5  ;;  %v3186_v5 = vld [vmem:[#allocation53_spill] sm:$0xff] }
 0x294   :  { %1240 = vmatpush.msra.mxu2 %v2782_v15  ;;  %1260 = vmatpush.msra.mxu3 %v2785_v20 }
 0x2f0   :  { %v898_v23 = vpop.f32.mrf.mxu0  ;;  %v918_v11 = vpop.f32.mrf.mxu1 }
 0x2f1   :  { %v961_v24 = vadd.f32 %v898_v23, %v3184_v27  ;;  %v962_v22 = vadd.f32 %v918_v11, %v3185_v10  ;;  %v3187_v10 = vld [vmem:[#allocation52_spill] sm:$0xff] }
 0x2f3   :  { %v1665_v21 = vmul.f32 -1.442695, %v961_v24  ;;  %v1666_v7 = vmul.f32 -1.442695, %v962_v22 }
 0x2f5   :  { %1738 = vpow2.f32 %v1665_v21 }
 0x2f6   :  { %1740 = vpow2.f32 %v1666_v7 }
 0x2f7   :  { %v958_v19 = vpop.f32.mrf.mxu3  ;;  %v938_v20 = vpop.f32.mrf.mxu2 }
 0x2f8   :  { %v964_v16 = vadd.f32 %v958_v19, %v3186_v5  ;;  %v963_v11 = vadd.f32 %v938_v20, %v3187_v10 }
 0x2fa   :  { %v1667_v14 = vmul.f32 -1.442695, %v964_v16 }
 0x2fb   :  { %v1739_v17 = vpop.eup %1738 }
 0x2fc   :  { %v1741_v15 = vpop.eup %1740  ;;  %v968_v28 = vadd.f32 1.0, %v1739_v17  ;;  %1742 = vpow2.f32 %v1667_v14 }
 0x2fd   :  { %v987_v8 = vadd.f32 1.0, %v1741_v15 }
 0x2fe   :  { %1744 = vrcp.f32 %v968_v28  ;;  %v980_v16 = vand.u32 2147483648, %v968_v28  ;;  %v978_v14 = vand.u32 2147483647, %v968_v28  ;;  %vm974_vm6 = vweird.f32 %v968_v28 }
 0x2ff   :  { %1746 = vrcp.f32 %v987_v8  ;;  %v999_v5 = vand.u32 2147483648, %v987_v8  ;;  %v997_v18 = vand.u32 2147483647, %v987_v8  ;;  %vm993_vm7 = vweird.f32 %v987_v8 }
 0x300   :  { %v981_v20 = vor.u32 1.1754944e-38, %v980_v16  ;;  %vm979_vm10 = vcmp.eq.f32.partialorder %v978_v14, 8.507059e+37 }
 0x301   :  { %vm998_vm11 = vcmp.eq.f32.partialorder %v997_v18, 8.507059e+37 }
 0x302   :  { %v1743_v25 = vpop.eup %1742 }
 0x303   :  { %v1007_v27 = vadd.f32 1.0, %v1743_v25 }
 0x304   :  { %v1745_v23 = vpop.eup %1744 }
 0x305   :  { %v1747_v22 = vpop.eup %1746  ;;  %v970_v21 = vmul.f32 %v1745_v23, %v968_v28  ;;  %1748 = vrcp.f32 %v1007_v27  ;;  %vm975_vm4 = vweird.f32 %v1745_v23  ;;  %v1019_v16 = vand.u32 2147483648, %v1007_v27 }
 0x306   :  { %v989_v24 = vmul.f32 %v1747_v22, %v987_v8  ;;  %1750 = vtanh.f32 %v963_v11  ;;  %vm994_vm5 = vweird.f32 %v1747_v22  ;;  %vm976_vm8 = vmor %vm974_vm6, %vm975_vm4  ;;  %vm1013_vm13 = vweird.f32 %v1007_v27 }
 0x307   :  { %v971_v7 = vsub.f32 1.0, %v970_v21  ;;  %vm995_vm9 = vmor %vm993_vm7, %vm994_vm5  ;;  %v1000_v21 = vor.u32 1.1754944e-38, %v999_v5  ;;  %v1020_v14 = vor.u32 1.1754944e-38, %v1019_v16  ;;  %v3206_v16 = vld [vmem:[#allocation34_spill] sm:$0xff] }
 0x308   :  { %v990_v19 = vsub.f32 1.0, %v989_v24 }
 0x309   :  { %v972_v17 = vmul.f32 %v1745_v23, %v971_v7 }
 0x30a   :  { %v991_v15 = vmul.f32 %v1747_v22, %v990_v19 }
 0x30b   :  { %v1749_v6 = vpop.eup %1748  ;;  %v973_v25 = vadd.f32 %v1745_v23, %v972_v17 }
 0x30c   :  { %v992_v10 = vadd.f32 %v1747_v22, %v991_v15  ;;  %v1009_v4 = vmul.f32 %v1749_v6, %v1007_v27  ;;  %v1751_v11 = vpop.eup %1750  ;;  %vm1014_vm12 = vweird.f32 %v1749_v6  ;;  %v3195_v15 = vld [vmem:[#allocation23_spill] sm:$0xff] }
 0x30d   :  { %v977_v24 = vsel %vm976_vm8, %v1745_v23, %v973_v25  ;;  %v1017_v23 = vand.u32 2147483647, %v1007_v27  ;;  %vm1015_vm14 = vmor %vm1013_vm13, %vm1014_vm12  ;;  %v3194_v27 = vld [vmem:[#allocation22_spill] sm:$0xff]  ;;  %v3196_v25 = vld [vmem:[#allocation25_spill] sm:$0xff] }
 0x30e   :  { %v982_v3 = vsel %vm979_vm10, %v981_v20, %v977_v24  ;;  %v996_v7 = vsel %vm995_vm9, %v1747_v22, %v992_v10  ;;  %v1010_v2 = vsub.f32 1.0, %v1009_v4  ;;  %v3197_v20 = vld [vmem:[#allocation24_spill] sm:$0xff]  ;;  %v3198_v10 = vld [vmem:[#allocation26_spill] sm:$0xff]  ;;  %v3200_v24 = vld [vmem:[#allocation29_spill] sm:$0xff] }
 0x30f   :  { %v1001_v19 = vsel %vm998_vm11, %v1000_v21, %v996_v7  ;;  %v1024_v1 = vmul.f32 %v1751_v11, %v982_v3  ;;  %vm1018_vm15 = vcmp.eq.f32.partialorder %v1017_v23, 8.507059e+37  ;;  %v3192_v3 = vld [vmem:[#allocation21_spill] sm:$0xff]  ;;  %v3199_v21 = vld [vmem:[#allocation27_spill] sm:$0xff]  ;;  %v3201_v11 = vld [vmem:[#allocation28_spill] sm:$0xff] }
 0x310   :  { %v1023_v12 = vmul.f32 %v1001_v19, %v2709_v9  ;;  %v1011_v17 = vmul.f32 %v1749_v6, %v1010_v2  ;;  %v3188_v9 = vld [vmem:[#allocation17_spill] sm:$0xff]  ;;  %v3191_v2 = vld [vmem:[#allocation19_spill] sm:$0xff]  ;;  %v3202_v7 = vld [vmem:[#allocation30_spill] sm:$0xff] }
 0x311   :  { %v3203_v19 = vld [vmem:[#allocation31_spill] sm:$0xff] }
 0x312   :  { %v2793_v28 = vadd.f32 %v1024_v1, %v1023_v12  ;;  %v1012_v8 = vadd.f32 %v1749_v6, %v1011_v17  ;;  %v3189_v12 = vld [vmem:[#allocation16_spill] sm:$0xff]  ;;  %v3190_v1 = vld [vmem:[#allocation18_spill] sm:$0xff]  ;;  %v3204_v17 = vld [vmem:[#allocation33_spill] sm:$0xff] }
 0x313   :  { %v3207_v23 = vld [vmem:[#allocation35_spill] sm:$0xff] }
 0x314   :  { %1752 = vtanh.f32 %v2793_v28  ;;  %v1016_v5 = vsel %vm1015_vm14, %v1749_v6, %v1012_v8  ;;  %v3193_v6 = vld [vmem:[#allocation20_spill] sm:$0xff] }
 0x315   :  { %v1021_v4 = vsel %vm1018_vm15, %v1020_v14, %v1016_v5  ;;  %v3205_v8 = vld [vmem:[#allocation32_spill] sm:$0xff]  ;;  %v3209_v14 = vld [vmem:[#allocation37_spill] sm:$0xff] }
 0x316   :  { %v3208_v5 = vld [vmem:[#allocation36_spill] sm:$0xff] }
 0x31a   :  { %v1753_v18 = vpop.eup %1752 }
 0x31b   :  { %v1027_v22 = vmul.f32 %v1753_v18, %v1021_v4  ;;  %v3210_v18 = vld [vmem:[#allocation38_spill] sm:$0xff]  ;;  %v3211_v4 = vld [vmem:[#allocation39_spill] sm:$0xff] }
 0x31d   :  { %1049 = vmatmul.f32.vlgmr.msrb.gmra.mxu0 %v1027_v22  ;;  %1069 = vmatmul.f32.vlgmr.msrb.gmra.mxu1 %v1027_v22 }
 0x31e   :  { %1089 = vmatmul.f32.vlgmr.msrb.gmra.mxu2 %v1027_v22  ;;  %1109 = vmatmul.f32.vlgmr.msrb.gmra.mxu3 %v1027_v22  ;;  %v3212_v22 = vld [vmem:[#allocation40_spill] sm:$0xff] }
 0x31f   :  { %1337 = vmatpush.msrb.mxu0 %v2524_v26  ;;  %1357 = vmatpush.msrb.mxu1 %v2527_v29 }
 0x320   :  { %1377 = vmatpush.msrb.mxu2 %v2530_v30  ;;  %1397 = vmatpush.msrb.mxu3 %v2533_v31 }
 0x321   :  { %1338 = vmatpush.msrb.mxu0 %v2536_v32  ;;  %1358 = vmatpush.msrb.mxu1 %v2539_v33 }
 0x322   :  { %1378 = vmatpush.msrb.mxu2 %v2542_v34  ;;  %1398 = vmatpush.msrb.mxu3 %v2545_v35 }
 0x323   :  { %1339 = vmatpush.msrb.mxu0 %v2548_v36  ;;  %1359 = vmatpush.msrb.mxu1 %v2551_v37 }
 0x324   :  { %1379 = vmatpush.msrb.mxu2 %v2554_v38  ;;  %1399 = vmatpush.msrb.mxu3 %v2557_v40 }
 0x325   :  { %1340 = vmatpush.msrb.mxu0 %v2560_v41  ;;  %1360 = vmatpush.msrb.mxu1 %v2563_v42 }
 0x326   :  { %1380 = vmatpush.msrb.mxu2 %v2566_v43  ;;  %1400 = vmatpush.msrb.mxu3 %v2569_v47 }
 0x327   :  { %1341 = vmatpush.msrb.mxu0 %v2572_v0  ;;  %1361 = vmatpush.msrb.mxu1 %v2575_v46 }
 0x328   :  { %1381 = vmatpush.msrb.mxu2 %v2578_v60  ;;  %1401 = vmatpush.msrb.mxu3 %v2581_v13 }
 0x329   :  { %1342 = vmatpush.msrb.mxu0 %v2584_v61  ;;  %1362 = vmatpush.msrb.mxu1 %v2587_v39 }
 0x32a   :  { %1382 = vmatpush.msrb.mxu2 %v2590_v50  ;;  %1402 = vmatpush.msrb.mxu3 %v2593_v63 }
 0x32b   :  { %1343 = vmatpush.msrb.mxu0 %v2596_v49  ;;  %1363 = vmatpush.msrb.mxu1 %v2599_v44 }
 0x32c   :  { %1383 = vmatpush.msrb.mxu2 %v2602_v45  ;;  %1403 = vmatpush.msrb.mxu3 %v2605_v52 }
 0x32d   :  { %1344 = vmatpush.msrb.mxu0 %v2608_v51  ;;  %1364 = vmatpush.msrb.mxu1 %v2611_v56 }
 0x32e   :  { %1384 = vmatpush.msrb.mxu2 %v2614_v53  ;;  %1404 = vmatpush.msrb.mxu3 %v2617_v48 }
 0x32f   :  { %1345 = vmatpush.msrb.mxu0 %v2620_v54  ;;  %1365 = vmatpush.msrb.mxu1 %v2623_v57 }
 0x330   :  { %1385 = vmatpush.msrb.mxu2 %v2626_v58  ;;  %1405 = vmatpush.msrb.mxu3 %v2629_v62 }
 0x331   :  { %1346 = vmatpush.msrb.mxu0 %v2632_v59  ;;  %1366 = vmatpush.msrb.mxu1 %v2635_v55 }
 0x332   :  { %1386 = vmatpush.msrb.mxu2 %v3188_v9  ;;  %1406 = vmatpush.msrb.mxu3 %v3189_v12 }
 0x333   :  { %1347 = vmatpush.msrb.mxu0 %v3190_v1  ;;  %1367 = vmatpush.msrb.mxu1 %v3191_v2 }
 0x334   :  { %1387 = vmatpush.msrb.mxu2 %v3192_v3  ;;  %1407 = vmatpush.msrb.mxu3 %v3193_v6 }
 0x335   :  { %1348 = vmatpush.msrb.mxu0 %v3194_v27  ;;  %1368 = vmatpush.msrb.mxu1 %v3195_v15 }
 0x336   :  { %1388 = vmatpush.msrb.mxu2 %v3196_v25  ;;  %1408 = vmatpush.msrb.mxu3 %v3197_v20 }
 0x337   :  { %1349 = vmatpush.msrb.mxu0 %v3198_v10  ;;  %1369 = vmatpush.msrb.mxu1 %v3199_v21 }
 0x338   :  { %1389 = vmatpush.msrb.mxu2 %v3200_v24  ;;  %1409 = vmatpush.msrb.mxu3 %v3201_v11  ;;  %v3214_v11 = vld [vmem:[#allocation54_spill] sm:$0xff]  ;;  %v3215_v24 = vld [vmem:[#allocation55_spill] sm:$0xff] }
 0x339   :  { %1350 = vmatpush.msrb.mxu0 %v3202_v7  ;;  %1370 = vmatpush.msrb.mxu1 %v3203_v19  ;;  %v3213_v7 = vld [vmem:[#allocation41_spill] sm:$0xff] }
 0x33a   :  { %1390 = vmatpush.msrb.mxu2 %v3204_v17  ;;  %1410 = vmatpush.msrb.mxu3 %v3205_v8 }
 0x33b   :  { %1351 = vmatpush.msrb.mxu0 %v3206_v16  ;;  %1371 = vmatpush.msrb.mxu1 %v3207_v23 }
 0x33c   :  { %1391 = vmatpush.msrb.mxu2 %v3208_v5  ;;  %1411 = vmatpush.msrb.mxu3 %v3209_v14  ;;  %v3216_v14 = vld [vmem:[#allocation57_spill] sm:$0xff] }
 0x33d   :  { %1352 = vmatpush.msrb.mxu0 %v3210_v18  ;;  %1372 = vmatpush.msrb.mxu1 %v3211_v4 }
 0x33e   :  { %1392 = vmatpush.msrb.mxu2 %v3212_v22  ;;  %1412 = vmatpush.msrb.mxu3 %v3213_v7 }
 0x39a   :  { %v1050_v19 = vpop.f32.mrf.mxu0  ;;  %v1070_v17 = vpop.f32.mrf.mxu1 }
 0x39b   :  { %v1113_v8 = vadd.f32 %v1050_v19, %v3214_v11  ;;  %v1114_v16 = vadd.f32 %v1070_v17, %v3215_v24  ;;  %v3217_v24 = vld [vmem:[#allocation56_spill] sm:$0xff] }
 0x39d   :  { %v1668_v21 = vmul.f32 -1.442695, %v1113_v8  ;;  %v1669_v23 = vmul.f32 -1.442695, %v1114_v16 }
 0x39f   :  { %1754 = vpow2.f32 %v1668_v21 }
 0x3a0   :  { %1756 = vpow2.f32 %v1669_v23 }
 0x3a1   :  { %v1110_v5 = vpop.f32.mrf.mxu3  ;;  %v1090_v7 = vpop.f32.mrf.mxu2 }
 0x3a2   :  { %v1116_v10 = vadd.f32 %v1110_v5, %v3216_v14  ;;  %v1115_v17 = vadd.f32 %v1090_v7, %v3217_v24 }
 0x3a4   :  { %v1670_v18 = vmul.f32 -1.442695, %v1116_v10 }
 0x3a5   :  { %v1755_v20 = vpop.eup %1754 }
 0x3a6   :  { %v1757_v4 = vpop.eup %1756  ;;  %v1120_v25 = vadd.f32 1.0, %v1755_v20  ;;  %1758 = vpow2.f32 %v1670_v18 }
 0x3a7   :  { %v1139_v22 = vadd.f32 1.0, %v1757_v4 }
 0x3a8   :  { %1760 = vrcp.f32 %v1120_v25  ;;  %v1132_v10 = vand.u32 2147483648, %v1120_v25  ;;  %v1130_v18 = vand.u32 2147483647, %v1120_v25  ;;  %vm1126_vm2 = vweird.f32 %v1120_v25 }
 0x3a9   :  { %1762 = vrcp.f32 %v1139_v22  ;;  %v1151_v14 = vand.u32 2147483648, %v1139_v22  ;;  %v1149_v27 = vand.u32 2147483647, %v1139_v22  ;;  %vm1145_vm3 = vweird.f32 %v1139_v22 }
 0x3aa   :  { %v1133_v7 = vor.u32 1.1754944e-38, %v1132_v10  ;;  %vm1131_vm6 = vcmp.eq.f32.partialorder %v1130_v18, 8.507059e+37 }
 0x3ab   :  { %vm1150_vm7 = vcmp.eq.f32.partialorder %v1149_v27, 8.507059e+37 }
 0x3ac   :  { %v1759_v15 = vpop.eup %1758 }
 0x3ad   :  { %v1159_v11 = vadd.f32 1.0, %v1759_v15 }
 0x3ae   :  { %v1761_v19 = vpop.eup %1760 }
 0x3af   :  { %v1763_v8 = vpop.eup %1762  ;;  %v1122_v21 = vmul.f32 %v1761_v19, %v1120_v25  ;;  %1764 = vrcp.f32 %v1159_v11  ;;  %vm1127_vm0 = vweird.f32 %v1761_v19  ;;  %v1171_v10 = vand.u32 2147483648, %v1159_v11 }
 0x3b0   :  { %v1141_v16 = vmul.f32 %v1763_v8, %v1139_v22  ;;  %1766 = vtanh.f32 %v1115_v17  ;;  %vm1146_vm1 = vweird.f32 %v1763_v8  ;;  %vm1128_vm4 = vmor %vm1126_vm2, %vm1127_vm0  ;;  %vm1165_vm9 = vweird.f32 %v1159_v11 }
 0x3b1   :  { %v1123_v23 = vsub.f32 1.0, %v1122_v21  ;;  %vm1147_vm5 = vmor %vm1145_vm3, %vm1146_vm1  ;;  %v1152_v21 = vor.u32 1.1754944e-38, %v1151_v14  ;;  %v1172_v18 = vor.u32 1.1754944e-38, %v1171_v10 }
 0x3b2   :  { %v1142_v5 = vsub.f32 1.0, %v1141_v16 }
 0x3b3   :  { %v1124_v20 = vmul.f32 %v1761_v19, %v1123_v23 }
 0x3b4   :  { %v1143_v4 = vmul.f32 %v1763_v8, %v1142_v5 }
 0x3b5   :  { %v1765_v6 = vpop.eup %1764  ;;  %v1125_v15 = vadd.f32 %v1761_v19, %v1124_v20 }
 0x3b6   :  { %v1144_v24 = vadd.f32 %v1763_v8, %v1143_v4  ;;  %v1161_v3 = vmul.f32 %v1765_v6, %v1159_v11  ;;  %v1767_v17 = vpop.eup %1766  ;;  %vm1166_vm8 = vweird.f32 %v1765_v6 }
 0x3b7   :  { %v1129_v16 = vsel %vm1128_vm4, %v1761_v19, %v1125_v15  ;;  %v1169_v19 = vand.u32 2147483647, %v1159_v11  ;;  %vm1167_vm10 = vmor %vm1165_vm9, %vm1166_vm8  ;;  %v3247_v15 = vld [vmem:[#allocation60_spill] sm:$0xff] }
 0x3b8   :  { %v1134_v2 = vsel %vm1131_vm6, %v1133_v7, %v1129_v16  ;;  %v1148_v23 = vsel %vm1147_vm5, %v1763_v8, %v1144_v24  ;;  %v1162_v1 = vsub.f32 1.0, %v1161_v3 }
 0x3b9   :  { %v1153_v5 = vsel %vm1150_vm7, %v1152_v21, %v1148_v23  ;;  %v1176_v12 = vmul.f32 %v1767_v17, %v1134_v2  ;;  %vm1170_vm11 = vcmp.eq.f32.partialorder %v1169_v19, 8.507059e+37 }
 0x3ba   :  { %v1175_v9 = vmul.f32 %v1153_v5, %v2793_v28  ;;  %v1163_v20 = vmul.f32 %v1765_v6, %v1162_v1 }
 0x3bc   :  { %v2865_v25 = vadd.f32 %v1176_v12, %v1175_v9  ;;  %v1164_v22 = vadd.f32 %v1765_v6, %v1163_v20 }
 0x3be   :  { %1768 = vtanh.f32 %v2865_v25  ;;  %v1168_v14 = vsel %vm1167_vm10, %v1765_v6, %v1164_v22 }
 0x3bf   :  { %v1173_v3 = vsel %vm1170_vm11, %v1172_v18, %v1168_v14 }
 0x3c4   :  { %v1769_v27 = vpop.eup %1768 }
 0x3c5   :  { %v1179_v8 = vmul.f32 %v1769_v27, %v1173_v3 }
 0x3c7   :  { %1201 = vmatmul.f32.vlgmr.msra.gmra.mxu0 %v1179_v8  ;;  %1221 = vmatmul.f32.vlgmr.msra.gmra.mxu1 %v1179_v8 }
 0x3c8   :  { %1241 = vmatmul.f32.vlgmr.msra.gmra.mxu2 %v1179_v8  ;;  %1261 = vmatmul.f32.vlgmr.msra.gmra.mxu3 %v1179_v8 }
 0x3c9   :  { %1489 = vmatpush.msra.mxu0 %v2524_v26  ;;  %1509 = vmatpush.msra.mxu1 %v2527_v29  ;;  %v3218_v26 = vld [vmem:[#allocation17_spill] sm:$0xff]  ;;  %v3219_v29 = vld [vmem:[#allocation16_spill] sm:$0xff] }
 0x3ca   :  { %1529 = vmatpush.msra.mxu2 %v2530_v30  ;;  %1549 = vmatpush.msra.mxu3 %v2533_v31  ;;  %v3220_v30 = vld [vmem:[#allocation18_spill] sm:$0xff]  ;;  %v3221_v31 = vld [vmem:[#allocation19_spill] sm:$0xff] }
 0x3cb   :  { %1490 = vmatpush.msra.mxu0 %v2536_v32  ;;  %1510 = vmatpush.msra.mxu1 %v2539_v33  ;;  %v3222_v32 = vld [vmem:[#allocation21_spill] sm:$0xff]  ;;  %v3223_v33 = vld [vmem:[#allocation20_spill] sm:$0xff] }
 0x3cc   :  { %1530 = vmatpush.msra.mxu2 %v2542_v34  ;;  %1550 = vmatpush.msra.mxu3 %v2545_v35  ;;  %v3224_v34 = vld [vmem:[#allocation22_spill] sm:$0xff]  ;;  %v3225_v35 = vld [vmem:[#allocation23_spill] sm:$0xff] }
 0x3cd   :  { %1491 = vmatpush.msra.mxu0 %v2548_v36  ;;  %1511 = vmatpush.msra.mxu1 %v2551_v37  ;;  %v3226_v36 = vld [vmem:[#allocation25_spill] sm:$0xff]  ;;  %v3227_v37 = vld [vmem:[#allocation24_spill] sm:$0xff] }
 0x3ce   :  { %1531 = vmatpush.msra.mxu2 %v2554_v38  ;;  %1551 = vmatpush.msra.mxu3 %v2557_v40  ;;  %v3228_v38 = vld [vmem:[#allocation26_spill] sm:$0xff]  ;;  %v3229_v40 = vld [vmem:[#allocation27_spill] sm:$0xff] }
 0x3cf   :  { %1492 = vmatpush.msra.mxu0 %v2560_v41  ;;  %1512 = vmatpush.msra.mxu1 %v2563_v42  ;;  %v3230_v41 = vld [vmem:[#allocation29_spill] sm:$0xff]  ;;  %v3231_v42 = vld [vmem:[#allocation28_spill] sm:$0xff] }
 0x3d0   :  { %1532 = vmatpush.msra.mxu2 %v2566_v43  ;;  %1552 = vmatpush.msra.mxu3 %v2569_v47  ;;  %v3232_v43 = vld [vmem:[#allocation30_spill] sm:$0xff]  ;;  %v3233_v47 = vld [vmem:[#allocation31_spill] sm:$0xff] }
 0x3d1   :  { %1493 = vmatpush.msra.mxu0 %v2572_v0  ;;  %1513 = vmatpush.msra.mxu1 %v2575_v46  ;;  %v3234_v0 = vld [vmem:[#allocation33_spill] sm:$0xff]  ;;  %v3235_v46 = vld [vmem:[#allocation32_spill] sm:$0xff] }
 0x3d2   :  { %1533 = vmatpush.msra.mxu2 %v2578_v60  ;;  %1553 = vmatpush.msra.mxu3 %v2581_v13  ;;  %v3236_v60 = vld [vmem:[#allocation34_spill] sm:$0xff]  ;;  %v3237_v13 = vld [vmem:[#allocation35_spill] sm:$0xff] }
 0x3d3   :  { %1494 = vmatpush.msra.mxu0 %v2584_v61  ;;  %1514 = vmatpush.msra.mxu1 %v2587_v39  ;;  %v3238_v61 = vld [vmem:[#allocation36_spill] sm:$0xff]  ;;  %v3239_v39 = vld [vmem:[#allocation37_spill] sm:$0xff] }
 0x3d4   :  { %1534 = vmatpush.msra.mxu2 %v2590_v50  ;;  %1554 = vmatpush.msra.mxu3 %v2593_v63  ;;  %v3240_v50 = vld [vmem:[#allocation38_spill] sm:$0xff]  ;;  %v3241_v63 = vld [vmem:[#allocation39_spill] sm:$0xff] }
 0x3d5   :  { %1495 = vmatpush.msra.mxu0 %v2596_v49  ;;  %1515 = vmatpush.msra.mxu1 %v2599_v44  ;;  %v3242_v49 = vld [vmem:[#allocation40_spill] sm:$0xff]  ;;  %v3243_v44 = vld [vmem:[#allocation41_spill] sm:$0xff] }
 0x3d6   :  { %1535 = vmatpush.msra.mxu2 %v2602_v45  ;;  %1555 = vmatpush.msra.mxu3 %v2605_v52 }
 0x3d7   :  { %1496 = vmatpush.msra.mxu0 %v2608_v51  ;;  %1516 = vmatpush.msra.mxu1 %v2611_v56  ;;  %v3244_v51 = vld [vmem:[#allocation58_spill] sm:$0xff] }
 0x3d8   :  { %1536 = vmatpush.msra.mxu2 %v2614_v53  ;;  %1556 = vmatpush.msra.mxu3 %v2617_v48  ;;  %v3245_v53 = vld [vmem:[#allocation59_spill] sm:$0xff] }
 0x3d9   :  { %1497 = vmatpush.msra.mxu0 %v2620_v54  ;;  %1517 = vmatpush.msra.mxu1 %v2623_v57 }
 0x3da   :  { %1537 = vmatpush.msra.mxu2 %v2626_v58  ;;  %1557 = vmatpush.msra.mxu3 %v2629_v62  ;;  %v3246_v62 = vld [vmem:[#allocation61_spill] sm:$0xff] }
 0x3db   :  { %1498 = vmatpush.msra.mxu0 %v2632_v59  ;;  %1518 = vmatpush.msra.mxu1 %v2635_v55 }
 0x3dc   :  { %1538 = vmatpush.msra.mxu2 %v3218_v26  ;;  %1558 = vmatpush.msra.mxu3 %v3219_v29 }
 0x3dd   :  { %1499 = vmatpush.msra.mxu0 %v3220_v30  ;;  %1519 = vmatpush.msra.mxu1 %v3221_v31 }
 0x3de   :  { %1539 = vmatpush.msra.mxu2 %v3222_v32  ;;  %1559 = vmatpush.msra.mxu3 %v3223_v33 }
 0x3df   :  { %1500 = vmatpush.msra.mxu0 %v3224_v34  ;;  %1520 = vmatpush.msra.mxu1 %v3225_v35 }
 0x3e0   :  { %1540 = vmatpush.msra.mxu2 %v3226_v36  ;;  %1560 = vmatpush.msra.mxu3 %v3227_v37 }
 0x3e1   :  { %1501 = vmatpush.msra.mxu0 %v3228_v38  ;;  %1521 = vmatpush.msra.mxu1 %v3229_v40 }
 0x3e2   :  { %1541 = vmatpush.msra.mxu2 %v3230_v41  ;;  %1561 = vmatpush.msra.mxu3 %v3231_v42 }
 0x3e3   :  { %1502 = vmatpush.msra.mxu0 %v3232_v43  ;;  %1522 = vmatpush.msra.mxu1 %v3233_v47 }
 0x3e4   :  { %1542 = vmatpush.msra.mxu2 %v3234_v0  ;;  %1562 = vmatpush.msra.mxu3 %v3235_v46 }
 0x3e5   :  { %1503 = vmatpush.msra.mxu0 %v3236_v60  ;;  %1523 = vmatpush.msra.mxu1 %v3237_v13 }
 0x3e6   :  { %1543 = vmatpush.msra.mxu2 %v3238_v61  ;;  %1563 = vmatpush.msra.mxu3 %v3239_v39  ;;  %v3248_v39 = vld [vmem:[#allocation62_spill] sm:$0xff] }
 0x3e7   :  { %1504 = vmatpush.msra.mxu0 %v3240_v50  ;;  %1524 = vmatpush.msra.mxu1 %v3241_v63  ;;  %v3249_v63 = vld [vmem:[#allocation63_spill] sm:$0xff] }
 0x3e8   :  { %1544 = vmatpush.msra.mxu2 %v3242_v49  ;;  %1564 = vmatpush.msra.mxu3 %v3243_v44 }
 0x444   :  { %v1202_v45 = vpop.f32.mrf.mxu0  ;;  %v1222_v52 = vpop.f32.mrf.mxu1 }
 0x445   :  { %v1265_v56 = vadd.f32 %v1202_v45, %v3244_v51  ;;  %v1266_v48 = vadd.f32 %v1222_v52, %v3245_v53  ;;  %v3250_v51 = vld [vmem:[#allocation65_spill] sm:$0xff] }
 0x447   :  { %v1671_v54 = vmul.f32 -1.442695, %v1265_v56  ;;  %v1672_v57 = vmul.f32 -1.442695, %v1266_v48 }
 0x449   :  { %1770 = vpow2.f32 %v1671_v54 }
 0x44a   :  { %1772 = vpow2.f32 %v1672_v57 }
 0x44b   :  { %v1262_v58 = vpop.f32.mrf.mxu3  ;;  %v1242_v2 = vpop.f32.mrf.mxu2 }
 0x44c   :  { %v1268_v59 = vadd.f32 %v1262_v58, %v3246_v62  ;;  %v1267_v7 = vadd.f32 %v1242_v2, %v3247_v15 }
 0x44e   :  { %v1673_v55 = vmul.f32 -1.442695, %v1268_v59 }
 0x44f   :  { %v1771_v28 = vpop.eup %1770 }
 0x450   :  { %v1773_v9 = vpop.eup %1772  ;;  %v1272_v12 = vadd.f32 1.0, %v1771_v28  ;;  %1774 = vpow2.f32 %v1673_v55 }
 0x451   :  { %v1291_v1 = vadd.f32 1.0, %v1773_v9  ;;  %v3251_v9 = vld [vmem:[#allocation64_spill] sm:$0xff] }
 0x452   :  { %1776 = vrcp.f32 %v1272_v12  ;;  %v1284_v5 = vand.u32 2147483648, %v1272_v12  ;;  %v1282_v10 = vand.u32 2147483647, %v1272_v12  ;;  %vm1278_vm14 = vweird.f32 %v1272_v12 }
 0x453   :  { %1778 = vrcp.f32 %v1291_v1  ;;  %v1303_v20 = vand.u32 2147483648, %v1291_v1  ;;  %v1301_v14 = vand.u32 2147483647, %v1291_v1  ;;  %vm1297_vm15 = vweird.f32 %v1291_v1 }
 0x454   :  { %v1285_v3 = vor.u32 1.1754944e-38, %v1284_v5  ;;  %vm1283_vm2 = vcmp.eq.f32.partialorder %v1282_v10, 8.507059e+37 }
 0x455   :  { %v1304_v29 = vor.u32 1.1754944e-38, %v1303_v20  ;;  %vm1302_vm3 = vcmp.eq.f32.partialorder %v1301_v14, 8.507059e+37 }
 0x456   :  { %v1775_v6 = vpop.eup %1774 }
 0x457   :  { %v1311_v11 = vadd.f32 1.0, %v1775_v6 }
 0x458   :  { %v1777_v4 = vpop.eup %1776 }
 0x459   :  { %v1779_v24 = vpop.eup %1778  ;;  %v1274_v21 = vmul.f32 %v1777_v4, %v1272_v12  ;;  %1780 = vrcp.f32 %v1311_v11  ;;  %vm1279_vm12 = vweird.f32 %v1777_v4  ;;  %v1323_v42 = vand.u32 2147483648, %v1311_v11 }
 0x45a   :  { %v1293_v16 = vmul.f32 %v1779_v24, %v1291_v1  ;;  %1782 = vtanh.f32 %v1267_v7  ;;  %vm1298_vm13 = vweird.f32 %v1779_v24  ;;  %vm1280_vm0 = vmor %vm1278_vm14, %vm1279_vm12  ;;  %vm1317_vm5 = vweird.f32 %v1311_v11 }
 0x45b   :  { %v1275_v17 = vsub.f32 1.0, %v1274_v21  ;;  %vm1299_vm1 = vmor %vm1297_vm15, %vm1298_vm13  ;;  %v1321_v43 = vand.u32 2147483647, %v1311_v11  ;;  %v1324_v0 = vor.u32 1.1754944e-38, %v1323_v42 }
 0x45c   :  { %v1294_v23 = vsub.f32 1.0, %v1293_v16 }
 0x45d   :  { %v1276_v22 = vmul.f32 %v1777_v4, %v1275_v17  ;;  %vm1322_vm7 = vcmp.eq.f32.partialorder %v1321_v43, 8.507059e+37 }
 0x45e   :  { %v1295_v19 = vmul.f32 %v1779_v24, %v1294_v23 }
 0x45f   :  { %v1781_v18 = vpop.eup %1780  ;;  %v1277_v27 = vadd.f32 %v1777_v4, %v1276_v22 }
 0x460   :  { %v1296_v8 = vadd.f32 %v1779_v24, %v1295_v19  ;;  %v1313_v26 = vmul.f32 %v1781_v18, %v1311_v11  ;;  %v1783_v31 = vpop.eup %1782  ;;  %vm1318_vm4 = vweird.f32 %v1781_v18 }
 0x461   :  { %v1281_v30 = vsel %vm1280_vm0, %v1777_v4, %v1277_v27  ;;  %vm1319_vm6 = vmor %vm1317_vm5, %vm1318_vm4 }
 0x462   :  { %v1286_v32 = vsel %vm1283_vm2, %v1285_v3, %v1281_v30  ;;  %v1300_v33 = vsel %vm1299_vm1, %v1779_v24, %v1296_v8  ;;  %v1314_v34 = vsub.f32 1.0, %v1313_v26 }
 0x463   :  { %v1305_v35 = vsel %vm1302_vm3, %v1304_v29, %v1300_v33  ;;  %v1328_v36 = vmul.f32 %v1783_v31, %v1286_v32 }
 0x464   :  { %v1327_v37 = vmul.f32 %v1305_v35, %v2865_v25  ;;  %v1315_v38 = vmul.f32 %v1781_v18, %v1314_v34 }
 0x466   :  { %v2937_v40 = vadd.f32 %v1328_v36, %v1327_v37  ;;  %v1316_v41 = vadd.f32 %v1781_v18, %v1315_v38 }
 0x468   :  { %1784 = vtanh.f32 %v2937_v40  ;;  %v1320_v47 = vsel %vm1319_vm6, %v1781_v18, %v1316_v41 }
 0x469   :  { %v1325_v60 = vsel %vm1322_vm7, %v1324_v0, %v1320_v47  ;;  %v3252_v47 = vld [vmem:[#allocation66_spill] sm:$0xff] }
 0x46e   :  { %v1785_v46 = vpop.eup %1784 }
 0x46f   :  { %v1331_v13 = vmul.f32 %v1785_v46, %v1325_v60  ;;  %v3253_v46 = vld [vmem:[#allocation67_spill] sm:$0xff] }
 0x471   :  { %1353 = vmatmul.f32.vlgmr.msrb.gmra.mxu0 %v1331_v13  ;;  %1373 = vmatmul.f32.vlgmr.msrb.gmra.mxu1 %v1331_v13 }
 0x472   :  { %1393 = vmatmul.f32.vlgmr.msrb.gmra.mxu2 %v1331_v13  ;;  %1413 = vmatmul.f32.vlgmr.msrb.gmra.mxu3 %v1331_v13 }
 0x4ee   :  { %v1354_v25 = vpop.f32.mrf.mxu0  ;;  %v1374_v61 = vpop.f32.mrf.mxu1 }
 0x4ef   :  { %v1417_v50 = vadd.f32 %v1354_v25, %v3248_v39  ;;  %v1418_v49 = vadd.f32 %v1374_v61, %v3249_v63  ;;  %v3254_v39 = vld [vmem:[#allocation69_spill] sm:$0xff] }
 0x4f1   :  { %v1674_v44 = vmul.f32 -1.442695, %v1417_v50  ;;  %v1675_v45 = vmul.f32 -1.442695, %v1418_v49 }
 0x4f3   :  { %1786 = vpow2.f32 %v1674_v44 }
 0x4f4   :  { %1788 = vpow2.f32 %v1675_v45 }
 0x4f5   :  { %v1414_v52 = vpop.f32.mrf.mxu3  ;;  %v1394_v62 = vpop.f32.mrf.mxu2 }
 0x4f6   :  { %v1420_v56 = vadd.f32 %v1414_v52, %v3250_v51  ;;  %v1419_v12 = vadd.f32 %v1394_v62, %v3251_v9 }
 0x4f8   :  { %v1676_v53 = vmul.f32 -1.442695, %v1420_v56 }
 0x4f9   :  { %v1787_v48 = vpop.eup %1786 }
 0x4fa   :  { %v1789_v54 = vpop.eup %1788  ;;  %v1424_v57 = vadd.f32 1.0, %v1787_v48  ;;  %1790 = vpow2.f32 %v1676_v53 }
 0x4fb   :  { %v1443_v58 = vadd.f32 1.0, %v1789_v54  ;;  %v3255_v54 = vld [vmem:[#allocation68_spill] sm:$0xff] }
 0x4fc   :  { %1792 = vrcp.f32 %v1424_v57  ;;  %v1436_v15 = vand.u32 2147483648, %v1424_v57  ;;  %v1434_v21 = vand.u32 2147483647, %v1424_v57  ;;  %vm1430_vm10 = vweird.f32 %v1424_v57 }
 0x4fd   :  { %1794 = vrcp.f32 %v1443_v58  ;;  %v1455_v7 = vand.u32 2147483648, %v1443_v58  ;;  %v1453_v17 = vand.u32 2147483647, %v1443_v58  ;;  %vm1449_vm11 = vweird.f32 %v1443_v58 }
 0x4fe   :  { %v1437_v20 = vor.u32 1.1754944e-38, %v1436_v15  ;;  %vm1435_vm14 = vcmp.eq.f32.partialorder %v1434_v21, 8.507059e+37 }
 0x4ff   :  { %v1456_v19 = vor.u32 1.1754944e-38, %v1455_v7  ;;  %vm1454_vm15 = vcmp.eq.f32.partialorder %v1453_v17, 8.507059e+37 }
 0x500   :  { %v1791_v59 = vpop.eup %1790 }
 0x501   :  { %v1463_v55 = vadd.f32 1.0, %v1791_v59 }
 0x502   :  { %v1793_v28 = vpop.eup %1792 }
 0x503   :  { %v1795_v1 = vpop.eup %1794  ;;  %v1426_v2 = vmul.f32 %v1793_v28, %v1424_v57  ;;  %1796 = vrcp.f32 %v1463_v55  ;;  %vm1431_vm8 = vweird.f32 %v1793_v28  ;;  %v1475_v34 = vand.u32 2147483648, %v1463_v55 }
 0x504   :  { %v1445_v6 = vmul.f32 %v1795_v1, %v1443_v58  ;;  %1798 = vtanh.f32 %v1419_v12  ;;  %vm1450_vm9 = vweird.f32 %v1795_v1  ;;  %vm1432_vm12 = vmor %vm1430_vm10, %vm1431_vm8  ;;  %vm1469_vm1 = vweird.f32 %v1463_v55 }
 0x505   :  { %v1427_v11 = vsub.f32 1.0, %v1426_v2  ;;  %vm1451_vm13 = vmor %vm1449_vm11, %vm1450_vm9  ;;  %v1473_v35 = vand.u32 2147483647, %v1463_v55  ;;  %v1476_v37 = vor.u32 1.1754944e-38, %v1475_v34 }
 0x506   :  { %v1446_v4 = vsub.f32 1.0, %v1445_v6 }
 0x507   :  { %v1428_v24 = vmul.f32 %v1793_v28, %v1427_v11  ;;  %vm1474_vm3 = vcmp.eq.f32.partialorder %v1473_v35, 8.507059e+37 }
 0x508   :  { %v1447_v16 = vmul.f32 %v1795_v1, %v1446_v4 }
 0x509   :  { %v1797_v23 = vpop.eup %1796  ;;  %v1429_v5 = vadd.f32 %v1793_v28, %v1428_v24 }
 0x50a   :  { %v1448_v22 = vadd.f32 %v1795_v1, %v1447_v16  ;;  %v1465_v10 = vmul.f32 %v1797_v23, %v1463_v55  ;;  %v1799_v18 = vpop.eup %1798  ;;  %vm1470_vm0 = vweird.f32 %v1797_v23 }
 0x50b   :  { %v1433_v14 = vsel %vm1432_vm12, %v1793_v28, %v1429_v5  ;;  %vm1471_vm2 = vmor %vm1469_vm1, %vm1470_vm0 }
 0x50c   :  { %v1438_v27 = vsel %vm1435_vm14, %v1437_v20, %v1433_v14  ;;  %v1452_v3 = vsel %vm1451_vm13, %v1795_v1, %v1448_v22  ;;  %v1466_v8 = vsub.f32 1.0, %v1465_v10 }
 0x50d   :  { %v1457_v26 = vsel %vm1454_vm15, %v1456_v19, %v1452_v3  ;;  %v1480_v29 = vmul.f32 %v1799_v18, %v1438_v27 }
 0x50e   :  { %v1479_v30 = vmul.f32 %v1457_v26, %v2937_v40  ;;  %v1467_v31 = vmul.f32 %v1797_v23, %v1466_v8 }
 0x510   :  { %v2945_v32 = vadd.f32 %v1480_v29, %v1479_v30  ;;  %v1468_v33 = vadd.f32 %v1797_v23, %v1467_v31 }
 0x512   :  { %1800 = vtanh.f32 %v2945_v32  ;;  %v1472_v36 = vsel %vm1471_vm2, %v1797_v23, %v1468_v33 }
 0x513   :  { %v1477_v41 = vsel %vm1474_vm3, %v1476_v37, %v1472_v36 }
 0x518   :  { %v1801_v38 = vpop.eup %1800 }
 0x519   :  { %v1483_v42 = vmul.f32 %v1801_v38, %v1477_v41 }
 0x51b   :  { %1505 = vmatmul.f32.vlgmr.msra.gmra.mxu0 %v1483_v42  ;;  %1525 = vmatmul.f32.vlgmr.msra.gmra.mxu1 %v1483_v42 }
 0x51c   :  { %1545 = vmatmul.f32.vlgmr.msra.gmra.mxu2 %v1483_v42  ;;  %1565 = vmatmul.f32.vlgmr.msra.gmra.mxu3 %v1483_v42 }
 0x598   :  { %v1506_v40 = vpop.f32.mrf.mxu0  ;;  %v1526_v43 = vpop.f32.mrf.mxu1 }
 0x599   :  { %v1569_v0 = vadd.f32 %v1506_v40, %v3252_v47  ;;  %v1570_v60 = vadd.f32 %v1526_v43, %v3253_v46 }
 0x59b   :  { %v1677_v13 = vmul.f32 -1.442695, %v1569_v0  ;;  %v1678_v25 = vmul.f32 -1.442695, %v1570_v60 }
 0x59d   :  { %1802 = vpow2.f32 %v1677_v13 }
 0x59e   :  { %1804 = vpow2.f32 %v1678_v25 }
 0x59f   :  { %v1566_v61 = vpop.f32.mrf.mxu3  ;;  %v1546_v51 = vpop.f32.mrf.mxu2 }
 0x5a0   :  { %v1572_v50 = vadd.f32 %v1566_v61, %v3254_v39  ;;  %v1571_v57 = vadd.f32 %v1546_v51, %v3255_v54 }
 0x5a2   :  { %v1679_v63 = vmul.f32 -1.442695, %v1572_v50 }
 0x5a3   :  { %v1803_v49 = vpop.eup %1802 }
 0x5a4   :  { %v1805_v44 = vpop.eup %1804  ;;  %v1576_v45 = vadd.f32 1.0, %v1803_v49  ;;  %1806 = vpow2.f32 %v1679_v63 }
 0x5a5   :  { %v1595_v52 = vadd.f32 1.0, %v1805_v44 }
 0x5a6   :  { %1808 = vrcp.f32 %v1576_v45  ;;  %v1588_v9 = vand.u32 2147483648, %v1576_v45  ;;  %v1586_v2 = vand.u32 2147483647, %v1576_v45  ;;  %vm1582_vm6 = vweird.f32 %v1576_v45 }
 0x5a7   :  { %1810 = vrcp.f32 %v1595_v52  ;;  %v1607_v12 = vand.u32 2147483648, %v1595_v52  ;;  %v1605_v11 = vand.u32 2147483647, %v1595_v52  ;;  %vm1601_vm7 = vweird.f32 %v1595_v52 }
 0x5a8   :  { %v1589_v7 = vor.u32 1.1754944e-38, %v1588_v9  ;;  %vm1587_vm10 = vcmp.eq.f32.partialorder %v1586_v2, 8.507059e+37 }
 0x5a9   :  { %v1608_v16 = vor.u32 1.1754944e-38, %v1607_v12  ;;  %vm1606_vm11 = vcmp.eq.f32.partialorder %v1605_v11, 8.507059e+37 }
 0x5aa   :  { %v1807_v56 = vpop.eup %1806 }
 0x5ab   :  { %v1615_v53 = vadd.f32 1.0, %v1807_v56 }
 0x5ac   :  { %v1809_v48 = vpop.eup %1808 }
 0x5ad   :  { %v1811_v58 = vpop.eup %1810  ;;  %v1578_v62 = vmul.f32 %v1809_v48, %v1576_v45  ;;  %1812 = vrcp.f32 %v1615_v53  ;;  %vm1583_vm4 = vweird.f32 %v1809_v48  ;;  %v1627_v8 = vand.u32 2147483648, %v1615_v53 }
 0x5ae   :  { %v1597_v59 = vmul.f32 %v1811_v58, %v1595_v52  ;;  %1814 = vtanh.f32 %v1571_v57  ;;  %vm1602_vm5 = vweird.f32 %v1811_v58  ;;  %vm1584_vm8 = vmor %vm1582_vm6, %vm1583_vm4  ;;  %vm1621_vm13 = vweird.f32 %v1615_v53 }
 0x5af   :  { %v1579_v55 = vsub.f32 1.0, %v1578_v62  ;;  %vm1603_vm9 = vmor %vm1601_vm7, %vm1602_vm5  ;;  %v1625_v26 = vand.u32 2147483647, %v1615_v53  ;;  %v1628_v30 = vor.u32 1.1754944e-38, %v1627_v8 }
 0x5b0   :  { %v1598_v28 = vsub.f32 1.0, %v1597_v59 }
 0x5b1   :  { %v1580_v1 = vmul.f32 %v1809_v48, %v1579_v55  ;;  %vm1626_vm15 = vcmp.eq.f32.partialorder %v1625_v26, 8.507059e+37 }
 0x5b2   :  { %v1599_v6 = vmul.f32 %v1811_v58, %v1598_v28 }
 0x5b3   :  { %v1813_v4 = vpop.eup %1812  ;;  %v1581_v15 = vadd.f32 %v1809_v48, %v1580_v1 }
 0x5b4   :  { %v1600_v24 = vadd.f32 %v1811_v58, %v1599_v6  ;;  %v1617_v21 = vmul.f32 %v1813_v4, %v1615_v53  ;;  %v1815_v23 = vpop.eup %1814  ;;  %vm1622_vm12 = vweird.f32 %v1813_v4 }
 0x5b5   :  { %v1585_v17 = vsel %vm1584_vm8, %v1809_v48, %v1581_v15  ;;  %vm1623_vm14 = vmor %vm1621_vm13, %vm1622_vm12 }
 0x5b6   :  { %v1590_v5 = vsel %vm1587_vm10, %v1589_v7, %v1585_v17  ;;  %v1604_v20 = vsel %vm1603_vm9, %v1811_v58, %v1600_v24  ;;  %v1618_v22 = vsub.f32 1.0, %v1617_v21 }
 0x5b7   :  { %v1609_v10 = vsel %vm1606_vm11, %v1608_v16, %v1604_v20  ;;  %v1632_v19 = vmul.f32 %v1815_v23, %v1590_v5 }
 0x5b8   :  { %v1631_v14 = vmul.f32 %v1609_v10, %v2945_v32  ;;  %v1619_v18 = vmul.f32 %v1813_v4, %v1618_v22 }
 0x5ba   :  { %v1633_v27 = vadd.f32 %v1632_v19, %v1631_v14  ;;  %v1620_v3 = vadd.f32 %v1813_v4, %v1619_v18 }
 0x5bc   :  { %1816 = vtanh.f32 %v1633_v27  ;;  %v1624_v29 = vsel %vm1623_vm14, %v1813_v4, %v1620_v3 }
 0x5bd   :  { %v1629_v32 = vsel %vm1626_vm15, %v1628_v30, %v1624_v29 }
 0x5c2   :  { %v1817_v31 = vpop.eup %1816 }
 0x5c3   :  { %v1635_v33 = vmul.f32 %v1817_v31, %v1629_v32 }
 0x5c5   :  { %1636 = vst [vmem:[#allocation11] sm:$0xff] %v1635_v33 }
 0x5c6   :  { %1647 = dma.vmem_to_hbm [thread:$0]  %s1643_s3, 128, %s1645_s13, [#allocation5]  }
 0x5c7   :  { %2008 = dma.done.wait [#allocation5], 128  }
 0x5c8   :  { %2009 = vsyncadd [#allocation5], 4294967168 }
 0x5c9   :  { %1652 = vsyncpa [#allocation4], 1 }
 0x5ca   :  { %1653 = vsyncpa [#allocation7], 1 }
 0x5cb   :  { %1654 = vsyncpa [#allocation10], 1 }
 0x5cc   :  { %1655 = vsyncpa [#allocation5], 1 }

</bundles_post_ra>
